<compile_context>
chip_gen: v5e
topology: v5e:2x2
jax: 0.10.0
libtpu: 0.0.40
codegen_flags: <defaults>
</compile_context>

<pallas_src>
import functools

import jax
import jax.numpy as jnp
from jax.experimental import pallas as pl
from jax.experimental.pallas import tpu as pltpu

LANE = 128


def _round_up(n, m):
    return ((n + m - 1) // m) * m


def encoder_kernel(ximg_ref, wconv_ref, bconv_ref, wlin_ref, blin_ref, out_ref,
                   gap_acc, *, bt, th, w, cin, hw):
    """Fused 3x3 conv (in-kernel im2col) + ReLU + GAP accumulate + Linear finalize.

    Grid: (batch blocks [parallel], spatial row-slabs [arbitrary]).
      ximg_ref:  (bt, H+2, W+2, Cin) bf16  zero-padded image block (resident per batch block)
      wconv_ref: (9, Cin, Cfp)       bf16  conv taps, (dy*3+dx) major, channel rows
      bconv_ref: (1, Cfp)            f32   conv bias (zero in padded cols)
      wlin_ref:  (Cfp, Dp)           bf16  linear weight
      blin_ref:  (1, Dp)             f32   linear bias (zero in padded cols)
      out_ref:   (1, bt, Dp)         f32   per-image embeddings (written on last slab)
      gap_acc:   (bt, Cfp)           f32   per-image GAP accumulator (scratch)
    """
    t = pl.program_id(1)
    nt = pl.num_programs(1)
    cfp = wconv_ref.shape[-1]

    @pl.when(t == 0)
    def _():
        gap_acc[...] = jnp.zeros_like(gap_acc)

    # Row slab of output rows [t*th, t*th + th); needs padded rows [h0, h0 + th + 2).
    h0 = pl.multiple_of(t * th, th)
    slab = ximg_ref[:, pl.ds(h0, th + 2), :, :]                # (bt, th+2, W+2, Cin) bf16

    # In-kernel im2col: 9 shifted accumulate-matmuls, contraction dim = Cin (unpadded).
    acc = jnp.zeros((bt * th * w, cfp), jnp.float32)
    for dy in range(3):
        rows = slab[:, dy:dy + th, :, :]                       # (bt, th, W+2, Cin)
        for dx in range(3):
            tap = rows[:, :, dx:dx + w, :].reshape(bt * th * w, cin)
            acc = acc + jnp.dot(tap, wconv_ref[dy * 3 + dx],
                                preferred_element_type=jnp.float32)

    feat = jnp.maximum(acc + bconv_ref[...], 0.0)              # (bt*th*w, Cfp) f32
    # Partial GAP for this slab: accumulate the per-image row sums in f32 scratch.
    gap_acc[...] += jnp.sum(feat.reshape(bt, th * w, cfp), axis=1)

    @pl.when(t == nt - 1)
    def _():
        # Finalize: scale by hoisted 1/HW, then fuse the nn.Linear projection.
        g = (gap_acc[...] * (1.0 / hw)).astype(jnp.bfloat16)   # (bt, Cfp)
        emb = jnp.dot(g, wlin_ref[...],
                      preferred_element_type=jnp.float32) + blin_ref[...]
        out_ref[...] = emb.reshape(1, bt, emb.shape[-1])


def cnn_encoder(imgs_nchw, wconv, bconv, wlin, blin, *, bt=1, th=8):
    """Forward pass. imgs_nchw: [B, Cin, H, W] (PyTorch convention).

    wconv: (9*Cin, Cf) rows ordered (dy, dx, cin); bconv: (Cf,);
    wlin: (Cf, D) (transposed nn.Linear weight); blin: (D,).
    """
    x = jnp.transpose(imgs_nchw, (0, 2, 3, 1)).astype(jnp.float32)   # NCHW -> NHWC
    B, H, W, Cin = x.shape
    HW = H * W
    Cf = wconv.shape[1]
    D = wlin.shape[1]
    assert wconv.shape[0] == 9 * Cin
    assert B % bt == 0, "keep the batch unpadded: pick bt that divides B"
    assert H % th == 0, "pick a spatial slab height that divides H"
    nb = B // bt
    nt = H // th

    # Lane-aligned feature / embedding dims (zero padding is exact, sliced off).
    Cfp = _round_up(Cf, LANE)
    Dp = _round_up(D, LANE)

    # Zero 'same'-padding of the image only (no im2col, no K or batch padding).
    xpad = jnp.pad(x, ((0, 0), (1, 1), (1, 1), (0, 0))).astype(jnp.bfloat16)

    wconv_p = jnp.pad(wconv.reshape(9, Cin, Cf),
                      ((0, 0), (0, 0), (0, Cfp - Cf))).astype(jnp.bfloat16)
    bconv_p = jnp.pad(bconv.reshape(1, Cf), ((0, 0), (0, Cfp - Cf))).astype(jnp.float32)
    wlin_p = jnp.pad(wlin, ((0, Cfp - Cf), (0, Dp - D))).astype(jnp.bfloat16)
    blin_p = jnp.pad(blin.reshape(1, D), ((0, 0), (0, Dp - D))).astype(jnp.float32)

    cost = pl.CostEstimate(
        flops=int(2 * B * HW * 9 * Cin * Cfp + 2 * B * Cfp * Dp),
        transcendentals=0,
        bytes_accessed=int(xpad.size * 2 + wconv_p.size * 2 + bconv_p.size * 4
                           + wlin_p.size * 2 + blin_p.size * 4 + nb * bt * Dp * 4),
    )

    out = pl.pallas_call(
        functools.partial(encoder_kernel, bt=bt, th=th, w=W, cin=Cin, hw=HW),
        out_shape=jax.ShapeDtypeStruct((nb, bt, Dp), jnp.float32),
        grid_spec=pltpu.PrefetchScalarGridSpec(
            num_scalar_prefetch=0,
            grid=(nb, nt),
            in_specs=[
                # Whole padded image block per batch step; constant index along the
                # spatial axis -> DMA'd from HBM once per batch block.
                pl.BlockSpec((bt, H + 2, W + 2, Cin), lambda b, t: (b, 0, 0, 0)),
                # Resident weights / biases (constant index maps).
                # TODO(synk): at real ResNet weight sizes, tile K/Cf here (256-multiple
                # N tiles for the 2x256^2 MXU) and use pipeline_mode=pl.Buffered(1)
                # so the resident weight is not double-buffered.
                pl.BlockSpec((9, Cin, Cfp), lambda b, t: (0, 0, 0)),
                pl.BlockSpec((1, Cfp), lambda b, t: (0, 0)),
                pl.BlockSpec((Cfp, Dp), lambda b, t: (0, 0)),
                pl.BlockSpec((1, Dp), lambda b, t: (0, 0)),
            ],
            out_specs=pl.BlockSpec((1, bt, Dp), lambda b, t: (b, 0, 0)),
            scratch_shapes=[pltpu.VMEM((bt, Cfp), jnp.float32)],
        ),
        compiler_params=pltpu.CompilerParams(
            dimension_semantics=("parallel", "arbitrary"),
            vmem_limit_bytes=32 * 1024 * 1024,
        ),
        cost_estimate=cost,
    )(xpad, wconv_p, bconv_p, wlin_p, blin_p)

    return out.reshape(B, Dp)[:, :D]                                  # [B, dim_embedding]


def cnn_encoder_ref(imgs_nchw, wconv, bconv, wlin, blin):
    """Pure-JAX f32 reference for correctness check."""
    x = jnp.transpose(imgs_nchw, (0, 2, 3, 1)).astype(jnp.float32)
    B, H, W, C = x.shape
    xp = jnp.pad(x, ((0, 0), (1, 1), (1, 1), (0, 0)))
    taps = [xp[:, dy:dy + H, dx:dx + W, :] for dy in range(3) for dx in range(3)]
    patches = jnp.stack(taps, axis=3).reshape(B, H * W, 9 * C)
    conv = jnp.einsum("bpk,kc->bpc", patches, wconv) + bconv.reshape(1, 1, -1)
    feat = jnp.maximum(conv, 0.0)
    gap = jnp.mean(feat, axis=1)                                      # (B, Cf)
    return gap @ wlin + blin.reshape(1, -1)


if __name__ == "__main__":
    # Small shapes consistent with the module's forward semantics.
    B, Cin, H, W = 2, 4, 16, 16       # imgs: [batch, channels, height, width]
    Cfeat = 64                        # stand-in for resnet.fc.in_features (=2048 in ResNet-152)
    dim_embedding = 32

    key = jax.random.PRNGKey(0)
    k_img, k_wc, k_bc, k_wl, k_bl = jax.random.split(key, 5)

    imgs = jax.random.normal(k_img, (B, Cin, H, W), dtype=jnp.float32)

    # Deterministic synthetic parameters.
    # Conv weight stored as (9*Cin, Cfeat) with rows ordered (dy, dx, cin).
    wconv = jax.random.normal(k_wc, (9 * Cin, Cfeat), dtype=jnp.float32) * 0.05
    bconv = jax.random.normal(k_bc, (Cfeat,), dtype=jnp.float32) * 0.05
    # nn.Linear(resnet.fc.in_features, dim_embedding): stored transposed (Cfeat, D).
    wlin = jax.random.normal(k_wl, (Cfeat, dim_embedding), dtype=jnp.float32) * 0.05
    blin = jax.random.normal(k_bl, (dim_embedding,), dtype=jnp.float32) * 0.05

    out = cnn_encoder(imgs, wconv, bconv, wlin, blin)
    out = jax.block_until_ready(out)

    ref = cnn_encoder_ref(imgs, wconv, bconv, wlin, blin)
    assert out.shape == (B, dim_embedding)
    # bf16 matmul inputs with f32 accumulation -> relaxed tolerance vs f32 reference.
    assert jnp.allclose(out, ref, atol=2e-2, rtol=2e-2), "mismatch vs JAX reference"

    print("KERNEL_OK")
</pallas_src>

<mosaic_0001>
module attributes {stable_mosaic.version = 11 : i64} {
  func.func @encoder_kernel(%arg0: i32, %arg1: i32, %arg2: memref<1x18x18x4xbf16, #tpu.memory_space<vmem>>, %arg3: memref<9x4x128xbf16, #tpu.memory_space<vmem>>, %arg4: memref<1x128xf32, #tpu.memory_space<vmem>>, %arg5: memref<128x128xbf16, #tpu.memory_space<vmem>>, %arg6: memref<1x128xf32, #tpu.memory_space<vmem>>, %arg7: memref<1x1x128xf32, #tpu.memory_space<vmem>>, %arg8: memref<1x128xf32, #tpu.memory_space<vmem>>) attributes {dimension_semantics = [#tpu.dimension_semantics<parallel>, #tpu.dimension_semantics<arbitrary>], iteration_bounds = array<i64: 2, 2>, scalar_prefetch = 0 : i64, scratch_operands = 1 : i64, tpu.core_type = #tpu.core_type<tc>, window_params = [{transform_indices = @transform_0, window_bounds = array<i64: 1, 18, 18, 4>}, {pipeline_mode = #tpu.pipeline_mode<synchronous>, transform_indices = @transform_1, window_bounds = array<i64: 9, 4, 128>}, {pipeline_mode = #tpu.pipeline_mode<synchronous>, transform_indices = @transform_2, window_bounds = array<i64: 1, 128>}, {pipeline_mode = #tpu.pipeline_mode<synchronous>, transform_indices = @transform_3, window_bounds = array<i64: 128, 128>}, {pipeline_mode = #tpu.pipeline_mode<synchronous>, transform_indices = @transform_4, window_bounds = array<i64: 1, 128>}, {transform_indices = @transform_5, window_bounds = array<i64: 1, 1, 128>}]} {
    %c0_i32 = arith.constant 0 : i32
    %0 = arith.cmpi eq, %arg1, %c0_i32 : i32
    %1 = arith.extui %0 : i1 to i32
    %c0_i32_0 = arith.constant 0 : i32
    %2 = arith.cmpi ne, %1, %c0_i32_0 : i32
    scf.if %2 {
      %cst_40 = arith.constant 0.000000e+00 : f32
      %78 = vector.broadcast %cst_40 : f32 to vector<1x128xf32>
      %c0_41 = arith.constant 0 : index
      %c0_42 = arith.constant 0 : index
      %79 = vector.load %arg8[%c0_41, %c0_42] : memref<1x128xf32, #tpu.memory_space<vmem>>, vector<1x128xf32>
      tpu.vector_store %arg8[%c0_41, %c0_42], %78 {strides = array<i32>} : memref<1x128xf32, #tpu.memory_space<vmem>>, vector<1x128xf32>,
    } else {
    }
    %c8_i32 = arith.constant 8 : i32
    %3 = arith.muli %arg1, %c8_i32 : i32
    %4 = tpu.assume_multiple %3, 8 : i32
    %c0 = arith.constant 0 : index
    %5 = arith.index_cast %4 : i32 to index
    %c0_1 = arith.constant 0 : index
    %c0_2 = arith.constant 0 : index
    %6 = vector.load %arg2[%c0, %5, %c0_1, %c0_2] : memref<1x18x18x4xbf16, #tpu.memory_space<vmem>>, vector<1x10x18x4xbf16>
    %cst = arith.constant 0.000000e+00 : f32
    %7 = vector.broadcast %cst : f32 to vector<128x128xf32>
    %8 = vector.extract_strided_slice %6 {offsets = [0, 0, 0, 0], sizes = [1, 8, 18, 4], strides = [1, 1, 1, 1]} : vector<1x10x18x4xbf16> to vector<1x8x18x4xbf16>
    %9 = vector.extract_strided_slice %8 {offsets = [0, 0, 0, 0], sizes = [1, 8, 16, 4], strides = [1, 1, 1, 1]} : vector<1x8x18x4xbf16> to vector<1x8x16x4xbf16>
    %10 = vector.shape_cast %9 : vector<1x8x16x4xbf16> to vector<128x4xbf16>
    %c0_3 = arith.constant 0 : index
    %c0_4 = arith.constant 0 : index
    %c0_5 = arith.constant 0 : index
    %11 = vector.load %arg3[%c0_3, %c0_4, %c0_5] : memref<9x4x128xbf16, #tpu.memory_space<vmem>>, vector<1x4x128xbf16>
    %12 = vector.shape_cast %11 : vector<1x4x128xbf16> to vector<4x128xbf16>
    %cst_6 = arith.constant dense<0.000000e+00> : vector<128x128xf32>
    %13 = tpu.matmul %10, %12, %cst_6 {dimension_numbers = #tpu.dot_dimension_numbers<[1], [0], [0], [1], [0, 0, 1, 1], [], []>} : vector<128x4xbf16>, vector<4x128xbf16>, vector<128x128xf32> -> vector<128x128xf32>
    %14 = arith.addf %7, %13 : vector<128x128xf32>
    %15 = vector.extract_strided_slice %8 {offsets = [0, 0, 1, 0], sizes = [1, 8, 16, 4], strides = [1, 1, 1, 1]} : vector<1x8x18x4xbf16> to vector<1x8x16x4xbf16>
    %16 = vector.shape_cast %15 : vector<1x8x16x4xbf16> to vector<128x4xbf16>
    %c1 = arith.constant 1 : index
    %c0_7 = arith.constant 0 : index
    %c0_8 = arith.constant 0 : index
    %17 = vector.load %arg3[%c1, %c0_7, %c0_8] : memref<9x4x128xbf16, #tpu.memory_space<vmem>>, vector<1x4x128xbf16>
    %18 = vector.shape_cast %17 : vector<1x4x128xbf16> to vector<4x128xbf16>
    %cst_9 = arith.constant dense<0.000000e+00> : vector<128x128xf32>
    %19 = tpu.matmul %16, %18, %cst_9 {dimension_numbers = #tpu.dot_dimension_numbers<[1], [0], [0], [1], [0, 0, 1, 1], [], []>} : vector<128x4xbf16>, vector<4x128xbf16>, vector<128x128xf32> -> vector<128x128xf32>
    %20 = arith.addf %14, %19 : vector<128x128xf32>
    %21 = vector.extract_strided_slice %8 {offsets = [0, 0, 2, 0], sizes = [1, 8, 16, 4], strides = [1, 1, 1, 1]} : vector<1x8x18x4xbf16> to vector<1x8x16x4xbf16>
    %22 = vector.shape_cast %21 : vector<1x8x16x4xbf16> to vector<128x4xbf16>
    %c2 = arith.constant 2 : index
    %c0_10 = arith.constant 0 : index
    %c0_11 = arith.constant 0 : index
    %23 = vector.load %arg3[%c2, %c0_10, %c0_11] : memref<9x4x128xbf16, #tpu.memory_space<vmem>>, vector<1x4x128xbf16>
    %24 = vector.shape_cast %23 : vector<1x4x128xbf16> to vector<4x128xbf16>
    %cst_12 = arith.constant dense<0.000000e+00> : vector<128x128xf32>
    %25 = tpu.matmul %22, %24, %cst_12 {dimension_numbers = #tpu.dot_dimension_numbers<[1], [0], [0], [1], [0, 0, 1, 1], [], []>} : vector<128x4xbf16>, vector<4x128xbf16>, vector<128x128xf32> -> vector<128x128xf32>
    %26 = arith.addf %20, %25 : vector<128x128xf32>
    %27 = vector.extract_strided_slice %6 {offsets = [0, 1, 0, 0], sizes = [1, 8, 18, 4], strides = [1, 1, 1, 1]} : vector<1x10x18x4xbf16> to vector<1x8x18x4xbf16>
    %28 = vector.extract_strided_slice %27 {offsets = [0, 0, 0, 0], sizes = [1, 8, 16, 4], strides = [1, 1, 1, 1]} : vector<1x8x18x4xbf16> to vector<1x8x16x4xbf16>
    %29 = vector.shape_cast %28 : vector<1x8x16x4xbf16> to vector<128x4xbf16>
    %c3 = arith.constant 3 : index
    %c0_13 = arith.constant 0 : index
    %c0_14 = arith.constant 0 : index
    %30 = vector.load %arg3[%c3, %c0_13, %c0_14] : memref<9x4x128xbf16, #tpu.memory_space<vmem>>, vector<1x4x128xbf16>
    %31 = vector.shape_cast %30 : vector<1x4x128xbf16> to vector<4x128xbf16>
    %cst_15 = arith.constant dense<0.000000e+00> : vector<128x128xf32>
    %32 = tpu.matmul %29, %31, %cst_15 {dimension_numbers = #tpu.dot_dimension_numbers<[1], [0], [0], [1], [0, 0, 1, 1], [], []>} : vector<128x4xbf16>, vector<4x128xbf16>, vector<128x128xf32> -> vector<128x128xf32>
    %33 = arith.addf %26, %32 : vector<128x128xf32>
    %34 = vector.extract_strided_slice %27 {offsets = [0, 0, 1, 0], sizes = [1, 8, 16, 4], strides = [1, 1, 1, 1]} : vector<1x8x18x4xbf16> to vector<1x8x16x4xbf16>
    %35 = vector.shape_cast %34 : vector<1x8x16x4xbf16> to vector<128x4xbf16>
    %c4 = arith.constant 4 : index
    %c0_16 = arith.constant 0 : index
    %c0_17 = arith.constant 0 : index
    %36 = vector.load %arg3[%c4, %c0_16, %c0_17] : memref<9x4x128xbf16, #tpu.memory_space<vmem>>, vector<1x4x128xbf16>
    %37 = vector.shape_cast %36 : vector<1x4x128xbf16> to vector<4x128xbf16>
    %cst_18 = arith.constant dense<0.000000e+00> : vector<128x128xf32>
    %38 = tpu.matmul %35, %37, %cst_18 {dimension_numbers = #tpu.dot_dimension_numbers<[1], [0], [0], [1], [0, 0, 1, 1], [], []>} : vector<128x4xbf16>, vector<4x128xbf16>, vector<128x128xf32> -> vector<128x128xf32>
    %39 = arith.addf %33, %38 : vector<128x128xf32>
    %40 = vector.extract_strided_slice %27 {offsets = [0, 0, 2, 0], sizes = [1, 8, 16, 4], strides = [1, 1, 1, 1]} : vector<1x8x18x4xbf16> to vector<1x8x16x4xbf16>
    %41 = vector.shape_cast %40 : vector<1x8x16x4xbf16> to vector<128x4xbf16>
    %c5 = arith.constant 5 : index
    %c0_19 = arith.constant 0 : index
    %c0_20 = arith.constant 0 : index
    %42 = vector.load %arg3[%c5, %c0_19, %c0_20] : memref<9x4x128xbf16, #tpu.memory_space<vmem>>, vector<1x4x128xbf16>
    %43 = vector.shape_cast %42 : vector<1x4x128xbf16> to vector<4x128xbf16>
    %cst_21 = arith.constant dense<0.000000e+00> : vector<128x128xf32>
    %44 = tpu.matmul %41, %43, %cst_21 {dimension_numbers = #tpu.dot_dimension_numbers<[1], [0], [0], [1], [0, 0, 1, 1], [], []>} : vector<128x4xbf16>, vector<4x128xbf16>, vector<128x128xf32> -> vector<128x128xf32>
    %45 = arith.addf %39, %44 : vector<128x128xf32>
    %46 = vector.extract_strided_slice %6 {offsets = [0, 2, 0, 0], sizes = [1, 8, 18, 4], strides = [1, 1, 1, 1]} : vector<1x10x18x4xbf16> to vector<1x8x18x4xbf16>
    %47 = vector.extract_strided_slice %46 {offsets = [0, 0, 0, 0], sizes = [1, 8, 16, 4], strides = [1, 1, 1, 1]} : vector<1x8x18x4xbf16> to vector<1x8x16x4xbf16>
    %48 = vector.shape_cast %47 : vector<1x8x16x4xbf16> to vector<128x4xbf16>
    %c6 = arith.constant 6 : index
    %c0_22 = arith.constant 0 : index
    %c0_23 = arith.constant 0 : index
    %49 = vector.load %arg3[%c6, %c0_22, %c0_23] : memref<9x4x128xbf16, #tpu.memory_space<vmem>>, vector<1x4x128xbf16>
    %50 = vector.shape_cast %49 : vector<1x4x128xbf16> to vector<4x128xbf16>
    %cst_24 = arith.constant dense<0.000000e+00> : vector<128x128xf32>
    %51 = tpu.matmul %48, %50, %cst_24 {dimension_numbers = #tpu.dot_dimension_numbers<[1], [0], [0], [1], [0, 0, 1, 1], [], []>} : vector<128x4xbf16>, vector<4x128xbf16>, vector<128x128xf32> -> vector<128x128xf32>
    %52 = arith.addf %45, %51 : vector<128x128xf32>
    %53 = vector.extract_strided_slice %46 {offsets = [0, 0, 1, 0], sizes = [1, 8, 16, 4], strides = [1, 1, 1, 1]} : vector<1x8x18x4xbf16> to vector<1x8x16x4xbf16>
    %54 = vector.shape_cast %53 : vector<1x8x16x4xbf16> to vector<128x4xbf16>
    %c7 = arith.constant 7 : index
    %c0_25 = arith.constant 0 : index
    %c0_26 = arith.constant 0 : index
    %55 = vector.load %arg3[%c7, %c0_25, %c0_26] : memref<9x4x128xbf16, #tpu.memory_space<vmem>>, vector<1x4x128xbf16>
    %56 = vector.shape_cast %55 : vector<1x4x128xbf16> to vector<4x128xbf16>
    %cst_27 = arith.constant dense<0.000000e+00> : vector<128x128xf32>
    %57 = tpu.matmul %54, %56, %cst_27 {dimension_numbers = #tpu.dot_dimension_numbers<[1], [0], [0], [1], [0, 0, 1, 1], [], []>} : vector<128x4xbf16>, vector<4x128xbf16>, vector<128x128xf32> -> vector<128x128xf32>
    %58 = arith.addf %52, %57 : vector<128x128xf32>
    %59 = vector.extract_strided_slice %46 {offsets = [0, 0, 2, 0], sizes = [1, 8, 16, 4], strides = [1, 1, 1, 1]} : vector<1x8x18x4xbf16> to vector<1x8x16x4xbf16>
    %60 = vector.shape_cast %59 : vector<1x8x16x4xbf16> to vector<128x4xbf16>
    %c8 = arith.constant 8 : index
    %c0_28 = arith.constant 0 : index
    %c0_29 = arith.constant 0 : index
    %61 = vector.load %arg3[%c8, %c0_28, %c0_29] : memref<9x4x128xbf16, #tpu.memory_space<vmem>>, vector<1x4x128xbf16>
    %62 = vector.shape_cast %61 : vector<1x4x128xbf16> to vector<4x128xbf16>
    %cst_30 = arith.constant dense<0.000000e+00> : vector<128x128xf32>
    %63 = tpu.matmul %60, %62, %cst_30 {dimension_numbers = #tpu.dot_dimension_numbers<[1], [0], [0], [1], [0, 0, 1, 1], [], []>} : vector<128x4xbf16>, vector<4x128xbf16>, vector<128x128xf32> -> vector<128x128xf32>
    %64 = arith.addf %58, %63 : vector<128x128xf32>
    %c0_31 = arith.constant 0 : index
    %c0_32 = arith.constant 0 : index
    %65 = vector.load %arg4[%c0_31, %c0_32] : memref<1x128xf32, #tpu.memory_space<vmem>>, vector<1x128xf32>
    %66 = vector.broadcast %65 : vector<1x128xf32> to vector<128x128xf32>
    %67 = arith.addf %64, %66 : vector<128x128xf32>
    %cst_33 = arith.constant 0.000000e+00 : f32
    %68 = vector.broadcast %cst_33 : f32 to vector<128x128xf32>
    %69 = arith.maximumf %67, %68 : vector<128x128xf32>
    %c0_34 = arith.constant 0 : index
    %c0_35 = arith.constant 0 : index
    %70 = vector.load %arg8[%c0_34, %c0_35] : memref<1x128xf32, #tpu.memory_space<vmem>>, vector<1x128xf32>
    %71 = vector.shape_cast %69 : vector<128x128xf32> to vector<1x128x128xf32>
    %cst_36 = arith.constant dense<0.000000e+00> : vector<1x128xf32>
    %72 = vector.multi_reduction <add>, %71, %cst_36 [1] : vector<1x128x128xf32> to vector<1x128xf32>
    %73 = arith.addf %70, %72 : vector<1x128xf32>
    %c0_37 = arith.constant 0 : index
    %c0_38 = arith.constant 0 : index
    %74 = vector.load %arg8[%c0_37, %c0_38] : memref<1x128xf32, #tpu.memory_space<vmem>>, vector<1x128xf32>
    tpu.vector_store %arg8[%c0_37, %c0_38], %73 {strides = array<i32>} : memref<1x128xf32, #tpu.memory_space<vmem>>, vector<1x128xf32>,
    %c1_i32 = arith.constant 1 : i32
    %75 = arith.cmpi eq, %arg1, %c1_i32 : i32
    %76 = arith.extui %75 : i1 to i32
    %c0_i32_39 = arith.constant 0 : i32
    %77 = arith.cmpi ne, %76, %c0_i32_39 : i32
    scf.if %77 {
      %c0_40 = arith.constant 0 : index
      %c0_41 = arith.constant 0 : index
      %78 = vector.load %arg8[%c0_40, %c0_41] : memref<1x128xf32, #tpu.memory_space<vmem>>, vector<1x128xf32>
      %cst_42 = arith.constant 3.906250e-03 : f32
      %79 = vector.broadcast %cst_42 : f32 to vector<1x128xf32>
      %80 = arith.mulf %78, %79 : vector<1x128xf32>
      %81 = arith.truncf %80 : vector<1x128xf32> to vector<1x128xbf16>
      %c0_43 = arith.constant 0 : index
      %c0_44 = arith.constant 0 : index
      %82 = vector.load %arg5[%c0_43, %c0_44] : memref<128x128xbf16, #tpu.memory_space<vmem>>, vector<128x128xbf16>
      %cst_45 = arith.constant dense<0.000000e+00> : vector<1x128xf32>
      %83 = tpu.matmul %81, %82, %cst_45 {dimension_numbers = #tpu.dot_dimension_numbers<[1], [0], [0], [1], [0, 0, 1, 1], [], []>} : vector<1x128xbf16>, vector<128x128xbf16>, vector<1x128xf32> -> vector<1x128xf32>
      %c0_46 = arith.constant 0 : index
      %c0_47 = arith.constant 0 : index
      %84 = vector.load %arg6[%c0_46, %c0_47] : memref<1x128xf32, #tpu.memory_space<vmem>>, vector<1x128xf32>
      %85 = arith.addf %83, %84 : vector<1x128xf32>
      %86 = vector.shape_cast %85 : vector<1x128xf32> to vector<1x1x128xf32>
      %c0_48 = arith.constant 0 : index
      %c0_49 = arith.constant 0 : index
      %c0_50 = arith.constant 0 : index
      %87 = vector.load %arg7[%c0_48, %c0_49, %c0_50] : memref<1x1x128xf32, #tpu.memory_space<vmem>>, vector<1x1x128xf32>
      tpu.vector_store %arg7[%c0_48, %c0_49, %c0_50], %86 {strides = array<i32>} : memref<1x1x128xf32, #tpu.memory_space<vmem>>, vector<1x1x128xf32>,
    } else {
    }
    return
  }
  func.func @transform_0(%arg0: i32, %arg1: i32) -> (i32, i32, i32, i32) {
    %c0_i32 = arith.constant 0 : i32
    %c0_i32_0 = arith.constant 0 : i32
    %c0_i32_1 = arith.constant 0 : i32
    %c0_i32_2 = arith.constant 0 : i32
    return %arg0, %c0_i32, %c0_i32_0, %c0_i32_1 : i32, i32, i32, i32
  }
  func.func @transform_1(%arg0: i32, %arg1: i32) -> (i32, i32, i32) {
    %c0_i32 = arith.constant 0 : i32
    %c0_i32_0 = arith.constant 0 : i32
    %c0_i32_1 = arith.constant 0 : i32
    %c0_i32_2 = arith.constant 0 : i32
    return %c0_i32, %c0_i32_0, %c0_i32_1 : i32, i32, i32
  }
  func.func @transform_2(%arg0: i32, %arg1: i32) -> (i32, i32) {
    %c0_i32 = arith.constant 0 : i32
    %c0_i32_0 = arith.constant 0 : i32
    %c0_i32_1 = arith.constant 0 : i32
    return %c0_i32, %c0_i32_0 : i32, i32
  }
  func.func @transform_3(%arg0: i32, %arg1: i32) -> (i32, i32) {
    %c0_i32 = arith.constant 0 : i32
    %c0_i32_0 = arith.constant 0 : i32
    %c0_i32_1 = arith.constant 0 : i32
    return %c0_i32, %c0_i32_0 : i32, i32
  }
  func.func @transform_4(%arg0: i32, %arg1: i32) -> (i32, i32) {
    %c0_i32 = arith.constant 0 : i32
    %c0_i32_0 = arith.constant 0 : i32
    %c0_i32_1 = arith.constant 0 : i32
    return %c0_i32, %c0_i32_0 : i32, i32
  }
  func.func @transform_5(%arg0: i32, %arg1: i32) -> (i32, i32, i32) {
    %c0_i32 = arith.constant 0 : i32
    %c0_i32_0 = arith.constant 0 : i32
    %c0_i32_1 = arith.constant 0 : i32
    return %arg0, %c0_i32, %c0_i32_0 : i32, i32, i32
  }
}

</mosaic_0001>

<bundles_post_ra>
// kernel: tpu_custom_call.1
= control target key start
LH: loop header
LB: loop body
LE: loop exit
PB: predicated region body
PF: predicated region fallthrough
CT: control target
= control target key end

     0   :  { %10 = vsyncpa [#allocation4], 0  ;;  %s2765_s0 = inlined_call_operand.vmem [shape: bf16[2,18,18,4], index: 0, kind: input, shape index: {}]   ;;  %s2766_s1 = inlined_call_operand.vmem [shape: bf16[9,4,128], index: 1, kind: input, shape index: {}]   ;;  %s2767_s2 = inlined_call_operand.vmem [shape: f32[1,128], index: 2, kind: input, shape index: {}]   ;;  %s2768_s3 = inlined_call_operand.vmem [shape: bf16[128,128], index: 3, kind: input, shape index: {}]   ;;  %s2769_s4 = inlined_call_operand.vmem [shape: f32[1,128], index: 4, kind: input, shape index: {}]   ;;  %s2770_s5 = inlined_call_operand.hbm [shape: f32[2,1,128], index: 5, kind: output, shape index: {}]  }
   0x1   :  { %12 = vsyncpa [#allocation4 + $0x1], 0  ;;  %s2024_s18 = smov 0   ;;  %s2026_s19 = smov 0  }
   0x2   :  { %s2028_s20 = smov 0   ;;  %s2030_s21 = smov 0  }
   0x3   :  { %s2032_s22 = smov 0   ;;  %s2034_s23 = smov 0  }
   0x4   :  { %s2036_s24 = smov 0   ;;  %s2038_s25 = smov 0  }
   0x5 LB: > { %s1626_s26 = sadd.s32 4294967295, %s1991_s25   ;;  %s1627_s27 = sadd.s32 4294967294, %s1991_s25   ;;  %s1991_s25 = sphi %s2038_s25, %s18_s25   ;;  %s1987_s24 = sphi %s2036_s24, %s2783_s24   ;;  %s1983_s23 = sphi %s2034_s23, %s2782_s23   ;;  %s1979_s22 = sphi %s2032_s22, %s2781_s22   ;;  %s1975_s21 = sphi %s2030_s21, %s2780_s21   ;;  %s1971_s20 = sphi %s2028_s20, %s2779_s20   ;;  %s1967_s19 = sphi %s2026_s19, %s2778_s19   ;;  %s1963_s18 = sphi %s2024_s18, %s2777_s18  }
   0x6   : > { %s27_s28 = sadd.s32 1, %s1983_s23  ;;  %s30_s29 = sadd.s32 1, %s1987_s24 }
   0x7   : > { %p28_p0 = scmp.ge.s32.totalorder %s27_s28, 2  ;;  %p157_p1 = scmp.ne.s32.totalorder %s1971_s20, %s1967_s19 }
   0x8   : > { %p158_p2 = scmp.eq.s32.totalorder %s1626_s26, 3  ;;  %p163_p4 = scmp.ne.s32.totalorder %s1967_s19, %s1963_s18 }
   0x9   : > { %s2785_s28 = smov (%p28_p0, %s27_s28), 0  ;;  %s2787_s29 = smov (!%p28_p0, %s30_s29), %s1987_s24 }
   0xa   : > { %p2073_p3 = por %p158_p2, %p157_p1  ;;  %p32_p5 = scmp.ge.s32.totalorder %s2787_s29, 2 }
   0xb   : > { %p164_p6 = scmp.eq.s32.totalorder %s1627_s27, 3  ;;  %p1630_p7 = scmp.ge.s32.totalorder %s1991_s25, 1 }
   0xc   : > { %p202_p8 = scmp.lt.s32.totalorder %s1991_s25, 5  ;;  %s2789_s29 = smov (%p32_p5, %s2787_s29), 0 }
   0xd   : > { %p2083_p9 = por %p164_p6, %p163_p4  ;;  %s144_s7 = ssub.s32 %s1987_s24, %s2789_s29 }
   0xe   : > { %p203_p10 = pnand %p1630_p7, %p202_p8  ;;  %s147_s8 = sadd.s32 1, %s1971_s20 }
   0xf   : > { %p145_p11 = scmp.eq.s32.totalorder %s144_s7, 0  ;;  %s227_s10 = sand.u32 (!%p203_p10), 1, %s1967_s19  }
  0x10   : > { %206 = sbr.rel (%p203_p10) target bundleno = 676 (0x2a4), region = 40  ;;  %p229_p12 = scmp.lt.s32.totalorder (!%p203_p10), %s1979_s22, 1 }
  0x11   : > { %s2091_s9 = scalar_select %p145_p11, %s1971_s20, %s147_s8  }
  0x12   : > { %s2101_s16 = scalar_lea.vmem (!%p203_p10), [#allocation3], %s227_s10  ;;  %p1632_p13 = scmp.ne.s32.totalorder (!%p203_p10), %s1975_s21, 0 }
  0x15   : > { %s230_s11 = scalar_select %p229_p12, %s1979_s22, 1 }
  0x16   : > { %238 = sbr.rel (%p1632_p13) target bundleno = 29 (0x1d), region = 44 }
  0x17   : > { %s1823_s12 = smul.u32 216, %s230_s11 }
  0x19   : > { %s233_s15 = scalar_lea.vmem %s2765_s0, %s1823_s12 }
  0x1b   : > { %v1993_v0 = vmov 0.0  }
  0x1c   : > { %239 = vst [vmem:[#allocation2] sm:$0x1] %v1993_v0 }
  0x1d PF: > { %v1636_v1 = vld [vmem:[%s2766_s1 + $0x2] sm:$0x3]  ;;  %vm521_vm0 = vcmask 1041408   ;;  %s1801_s27 = smul.u32 96, %s1975_s21  ;;  %v1693_v3 = vld [vmem:[%s2766_s1 + $0x4] sm:$0x3] }
  0x1e   : > { %v523_v2 = vsel %vm521_vm0, %v1636_v1, 0  ;;  %vm275_vm1 = vsmask.f32 3328  ;;  %vm276_vm2 = vsmask.f32 7440  ;;  %v808_v4 = vsel %vm521_vm0, %v1693_v3, 0 }
  0x1f   : > { %1820 = vmatpush.bf16.msra.mxu1 %v523_v2  ;;  %1821 = vmatpush.bf16.msra.mxu2 %v523_v2  ;;  %s2112_s11 = scalar_lea.vmem %s233_s15, %s1801_s27  ;;  %vm496_vm3 = vcmask 31744   ;;  %vm2151_vm4 = vmor %vm275_vm1, %vm276_vm2  ;;  %vm698_vm5 = vcmask 1042432   ;;  %vm699_vm6 = vcmask 1046532   ;;  %p1766_p0 = scmp.ne.s32.totalorder %s1975_s21, 1 }
  0x20   : > { %1822 = vmatpush.bf16.msra.mxu3 %v523_v2  ;;  %532 = vmatpush.bf16.msra.mxu0 %v523_v2  ;;  %v2116_v5 = vld [vmem:[%s2112_s11 + $0x18] sm:$0xf]  ;;  %v2119_v6 = vld [vmem:[%s2112_s11 + $0x1c] sm:$0xf]  ;;  %v2122_v7 = vld [vmem:[%s2112_s11 + $0x20] sm:$0x1] }
  0x21   : > { %v327_v8 = vshrl.u32 %v2116_v5, 16  ;;  %v330_v9 = vshll.u32 %v2116_v5, 16  ;;  %v336_v10 = vshll.u32 %v2119_v6, 16  ;;  %v340_v11 = vshrl.u32 %v2119_v6, 16  ;;  %v2129_v12 = vld [vmem:[%s2112_s11 + $0x30] sm:$0xf]  ;;  %vm2311_vm7 = vmor %vm698_vm5, %vm699_vm6 }
  0x22   : > { %v346_v13 = vshll.u32 %v2122_v7, 16  ;;  %v2133_v14 = vld [vmem:[%s2112_s11 + $0x34] sm:$0xf]  ;;  %v2136_v15 = vld [vmem:[%s2112_s11 + $0x38] sm:$0x1]  ;;  %v375_v16 = vshrl.u32 %v2129_v12, 16 }
  0x23   : > { %817 = vmatpush.bf16.msrb.mxu2 %v808_v4  ;;  %v329_v17 = vrot.slane %v327_v8, 4  ;;  %v332_v18 = vrot.slane %v330_v9, 5  ;;  %v338_v19 = vrot.slane %v336_v10, 5  ;;  %v342_v20 = vrot.slane %v340_v11, 4  ;;  %v2140_v21 = vld [vmem:[%s2112_s11 + $0x48] sm:$0xf] }
  0x24   : > { %v348_v22 = vrot.slane %v346_v13, 5  ;;  %v377_v23 = vrot.slane %v375_v16, 4  ;;  %v378_v24 = vshll.u32 %v2129_v12, 16  ;;  %v384_v25 = vshll.u32 %v2133_v14, 16  ;;  %v2147_v30 = vld [vmem:[%s2112_s11 + $0x4c] sm:$0xf] }
  0x25   : > { %v333_v26 = vor.u32 %v332_v18, %v329_v17  ;;  %v343_v27 = vor.u32 %v342_v20, %v338_v19  ;;  %v388_v28 = vshrl.u32 %v2133_v14, 16  ;;  %v394_v29 = vshll.u32 %v2136_v15, 16  ;;  %v2158_v41 = vld [vmem:[%s2112_s11 + $0x50] sm:$0x1]  ;;  %v2167_v49 = vld [vmem:[%s2112_s11] sm:$0xf] }
  0x26   : > { %v380_v32 = vrot.slane %v378_v24, 5  ;;  %v386_v33 = vrot.slane %v384_v25, 5  ;;  %v423_v34 = vshrl.u32 %v2140_v21, 16  ;;  %v426_v35 = vshll.u32 %v2140_v21, 16  ;;  %v2175_v61 = vld [vmem:[%s2112_s11 + $0x4] sm:$0xf] }
  0x27   : > { %v334_v36 = vrot.slane %v333_v26, 4  ;;  %v344_v37 = vrot.slane %v343_v27, 4  ;;  %v390_v38 = vrot.slane %v388_v28, 4  ;;  %v396_v39 = vrot.slane %v394_v29, 5  ;;  %v2181_v3 = vld [vmem:[%s2112_s11 + $0x8] sm:$0x1] }
  0x28   : > { %v381_v40 = vor.u32 %v380_v32, %v377_v23  ;;  %v425_v42 = vrot.slane %v423_v34, 4  ;;  %v428_v43 = vrot.slane %v426_v35, 5  ;;  %v432_v44 = vshll.u32 %v2147_v30, 16  ;;  %v1702_v4 = vld [vmem:[%s2766_s1 + $0x6] sm:$0x3] }
  0x29   : > { %v339_v45 = vsel %vm2151_vm4, %v334_v36, %v338_v19  ;;  %v349_v46 = vsel %vm2151_vm4, %v344_v37, %v348_v22  ;;  %v391_v47 = vor.u32 %v390_v38, %v386_v33  ;;  %v436_v48 = vshrl.u32 %v2147_v30, 16  ;;  %v274_v13 = vld [vmem:[%s2766_s1] sm:$0x3]  ;;  %v1715_v16 = vld [vmem:[%s2766_s1 + $0x8] sm:$0x3] }
  0x2a   : > { %v476_v50 = vunpack.c.l.b16 %v339_v45  ;;  %v477_v51 = vunpack.c.l.b16 %v349_v46  ;;  %v382_v52 = vrot.slane %v381_v40, 4  ;;  %v429_v53 = vor.u32 %v428_v43, %v425_v42  ;;  %v2200_v22 = vld [vmem:[%s2112_s11 + $0x24] sm:$0xf]  ;;  %v2216_v38 = vld [vmem:[%s2112_s11 + $0x2c] sm:$0x1] }
  0x2b   : > { %v392_v54 = vrot.slane %v391_v47, 4  ;;  %v434_v55 = vrot.slane %v432_v44, 5  ;;  %v438_v56 = vrot.slane %v436_v48, 4  ;;  %v442_v57 = vshll.u32 %v2158_v41, 16  ;;  %v2222_v44 = vld [vmem:[%s2112_s11 + $0x3c] sm:$0xf] }
  0x2c   : > { %v2170_v58 = vpack.c.b16 %v477_v51, %v476_v50  ;;  %v387_v59 = vsel %vm2151_vm4, %v382_v52, %v386_v33  ;;  %v430_v60 = vrot.slane %v429_v53, 4  ;;  %v279_v62 = vshrl.u32 %v2167_v49, 16  ;;  %v2210_v33 = vld [vmem:[%s2112_s11 + $0x28] sm:$0xf] }
  0x2d   : > { %v397_v63 = vsel %vm2151_vm4, %v392_v54, %v396_v39  ;;  %v480_v0 = vunpack.c.l.b16 %v387_v59  ;;  %v439_v1 = vor.u32 %v438_v56, %v434_v55  ;;  %v444_v2 = vrot.slane %v442_v57, 5  ;;  %v2230_v54 = vld [vmem:[%s2112_s11 + $0x40] sm:$0xf]  ;;  %v2237_v59 = vld [vmem:[%s2112_s11 + $0x44] sm:$0x1] }
  0x2e   : > { %1639 = vmatmul.msk.bf16.vlgmr.msra.gmra.mxu1 %vm496_vm3, %v2170_v58  ;;  %v481_v8 = vunpack.c.l.b16 %v397_v63  ;;  %v435_v9 = vsel %vm2151_vm4, %v430_v60, %v434_v55  ;;  %v281_v10 = vrot.slane %v279_v62, 4  ;;  %v282_v11 = vshll.u32 %v2167_v49, 16 }
  0x2f   : > { %v440_v17 = vrot.slane %v439_v1, 4  ;;  %v484_v18 = vunpack.c.l.b16 %v435_v9  ;;  %v288_v19 = vshll.u32 %v2175_v61, 16  ;;  %v292_v20 = vshrl.u32 %v2175_v61, 16 }
  0x30   : > { %v2202_v23 = vpack.c.b16 %v481_v8, %v480_v0  ;;  %v284_v24 = vrot.slane %v282_v11, 5  ;;  %v298_v25 = vshll.u32 %v2181_v3, 16  ;;  %v706_v26 = vrot.slane %v2181_v3, 5 }
  0x31   : > { %v445_v27 = vsel %vm2151_vm4, %v440_v17, %v444_v2  ;;  %v290_v28 = vrot.slane %v288_v19, 5  ;;  %v294_v29 = vrot.slane %v292_v20, 4  ;;  %v886_v32 = vsel %vm521_vm0, %v1702_v4, 0  ;;  %v2243_v2 = vld [vmem:[%s2112_s11 + $0x54] sm:$0xf] }
  0x32   : > { %1641 = vmatmul.msk.bf16.vlgmr.msra.gmra.mxu2 %vm496_vm3, %v2202_v23  ;;  %v485_v34 = vunpack.c.l.b16 %v445_v27  ;;  %v285_v35 = vor.u32 %v284_v24, %v281_v10  ;;  %v300_v36 = vrot.slane %v298_v25, 5  ;;  %895 = vmatpush.bf16.msrb.mxu3 %v886_v32  ;;  %v639_v37 = vsel %vm521_vm0, %v274_v13, 0  ;;  %v2253_v25 = vld [vmem:[%s2112_s11 + $0x5c] sm:$0x1] }
  0x33   : > { %v295_v39 = vor.u32 %v294_v29, %v290_v28  ;;  %648 = vmatpush.bf16.msrb.mxu1 %v639_v37  ;;  %v986_v40 = vsel %vm521_vm0, %v1715_v16, 0  ;;  %v351_v42 = vshrl.u32 %v2200_v22, 16  ;;  %v354_v43 = vshll.u32 %v2200_v22, 16 }
  0x34   : > { %v2224_v45 = vpack.c.b16 %v485_v34, %v484_v18  ;;  %v286_v46 = vrot.slane %v285_v35, 4  ;;  %995 = vmatpush.bf16.msrb.mxu0 %v986_v40  ;;  %v360_v47 = vshll.u32 %v2210_v33, 16  ;;  %v364_v48 = vshrl.u32 %v2210_v33, 16  ;;  %v2250_v18 = vld [vmem:[%s2112_s11 + $0x58] sm:$0xf] }
  0x35   : > { %v296_v50 = vrot.slane %v295_v39, 4  ;;  %v353_v51 = vrot.slane %v351_v42, 4  ;;  %v356_v52 = vrot.slane %v354_v43, 5  ;;  %v370_v53 = vshll.u32 %v2216_v38, 16  ;;  %v2259_v35 = vld [vmem:[%s2112_s11 + $0xc] sm:$0xf] }
  0x36   : > { %1643 = vmatmul.msk.bf16.vlgmr.msra.gmra.mxu3 %vm496_vm3, %v2224_v45  ;;  %v291_v55 = vsel %vm2151_vm4, %v286_v46, %v290_v28  ;;  %v362_v56 = vrot.slane %v360_v47, 5  ;;  %v366_v57 = vrot.slane %v364_v48, 4  ;;  %v399_v60 = vshrl.u32 %v2222_v44, 16 }
  0x37   : > { %v301_v62 = vsel %vm2151_vm4, %v296_v50, %v300_v36  ;;  %v472_v63 = vunpack.c.l.b16 %v291_v55  ;;  %v357_v0 = vor.u32 %v356_v52, %v353_v51  ;;  %v372_v1 = vrot.slane %v370_v53, 5 }
  0x38   : > { %v473_v4 = vunpack.c.l.b16 %v301_v62  ;;  %v367_v8 = vor.u32 %v366_v57, %v362_v56  ;;  %v401_v9 = vrot.slane %v399_v60, 4  ;;  %v402_v10 = vshll.u32 %v2222_v44, 16  ;;  %v2272_v60 = vld [vmem:[%s2112_s11 + $0x10] sm:$0xf] }
  0x39   : > { %v358_v11 = vrot.slane %v357_v0, 4  ;;  %v408_v13 = vshll.u32 %v2230_v54, 16  ;;  %v412_v16 = vshrl.u32 %v2230_v54, 16  ;;  %v418_v17 = vshll.u32 %v2237_v59, 16 }
  0x3a   : > { %v488_v19 = vpack.c.b16 %v473_v4, %v472_v63  ;;  %v368_v20 = vrot.slane %v367_v8, 4  ;;  %v404_v24 = vrot.slane %v402_v10, 5  ;;  %v447_v27 = vshrl.u32 %v2243_v2, 16 }
  0x3b   : > { %v363_v28 = vsel %vm2151_vm4, %v358_v11, %v362_v56  ;;  %v410_v29 = vrot.slane %v408_v13, 5  ;;  %v414_v32 = vrot.slane %v412_v16, 4  ;;  %v420_v34 = vrot.slane %v418_v17, 5 }
  0x3c   : > { %1637 = vmatmul.msk.bf16.vlgmr.msra.gmra.mxu0 %vm496_vm3, %v488_v19  ;;  %v373_v36 = vsel %vm2151_vm4, %v368_v20, %v372_v1  ;;  %v478_v37 = vunpack.c.l.b16 %v363_v28  ;;  %v405_v39 = vor.u32 %v404_v24, %v401_v9  ;;  %v449_v40 = vrot.slane %v447_v27, 4  ;;  %v2277_v1 = vld [vmem:[%s2112_s11 + $0x14] sm:$0x1]  ;;  %v1734_v28 = vld [vmem:[%s2766_s1 + $0xc] sm:$0x3] }
  0x3d   : > { %v479_v42 = vunpack.c.l.b16 %v373_v36  ;;  %v415_v43 = vor.u32 %v414_v32, %v410_v29  ;;  %v450_v46 = vshll.u32 %v2243_v2, 16  ;;  %v456_v47 = vshll.u32 %v2250_v18, 16 }
  0x3e   : > { %v406_v48 = vrot.slane %v405_v39, 4  ;;  %v460_v50 = vshrl.u32 %v2250_v18, 16  ;;  %v466_v51 = vshll.u32 %v2253_v25, 16  ;;  %v303_v52 = vshrl.u32 %v2259_v35, 16 }
  0x3f   : > { %v2269_v53 = vpack.c.b16 %v479_v42, %v478_v37  ;;  %v416_v55 = vrot.slane %v415_v43, 4  ;;  %v452_v56 = vrot.slane %v450_v46, 5  ;;  %v458_v57 = vrot.slane %v456_v47, 5  ;;  %v1747_v37 = vld [vmem:[%s2766_s1 + $0xe] sm:$0x3] }
  0x40   : > { %v411_v62 = vsel %vm2151_vm4, %v406_v48, %v410_v29  ;;  %v462_v63 = vrot.slane %v460_v50, 4  ;;  %v468_v0 = vrot.slane %v466_v51, 5  ;;  %v305_v4 = vrot.slane %v303_v52, 4  ;;  %v1725_v43 = vld [vmem:[%s2766_s1 + $0xa] sm:$0x3] }
  0x41   : > { %1640 = vmatmul.msk.bf16.gmra.mxu1 %vm496_vm3, %v2269_v53  ;;  %v421_v8 = vsel %vm2151_vm4, %v416_v55, %v420_v34  ;;  %v482_v9 = vunpack.c.l.b16 %v411_v62  ;;  %v453_v10 = vor.u32 %v452_v56, %v449_v40  ;;  %v306_v11 = vshll.u32 %v2259_v35, 16  ;;  %v1757_v46 = vld [vmem:[%s2766_s1 + $0x10] sm:$0x3] }
  0x42   : > { %v483_v13 = vunpack.c.l.b16 %v421_v8  ;;  %v463_v16 = vor.u32 %v462_v63, %v458_v57  ;;  %v312_v17 = vshll.u32 %v2272_v60, 16  ;;  %v316_v19 = vshrl.u32 %v2272_v60, 16 }
  0x43   : > { %v454_v20 = vrot.slane %v453_v10, 4  ;;  %v308_v24 = vrot.slane %v306_v11, 5  ;;  %v322_v27 = vshll.u32 %v2277_v1, 16  ;;  %v1685_v51 = vrot.slane %v2167_v49, 9 }
  0x44   : > { %v2290_v29 = vpack.c.b16 %v483_v13, %v482_v9  ;;  %v464_v32 = vrot.slane %v463_v16, 4  ;;  %v314_v34 = vrot.slane %v312_v17, 5  ;;  %v318_v36 = vrot.slane %v316_v19, 4 }
  0x45   : > { %v459_v39 = vsel %vm2151_vm4, %v454_v20, %v458_v57  ;;  %v309_v40 = vor.u32 %v308_v24, %v305_v4  ;;  %v324_v42 = vrot.slane %v322_v27, 5  ;;  %v703_v56 = vrot.slane %v2175_v61, 5  ;;  %v1802_v20 = vld [vmem:[%s2112_s11] sm:$0xff] }
  0x46   : > { %1642 = vmatmul.msk.bf16.gmra.mxu2 %vm496_vm3, %v2290_v29  ;;  %v469_v47 = vsel %vm2151_vm4, %v464_v32, %v468_v0  ;;  %v486_v48 = vunpack.c.l.b16 %v459_v39  ;;  %v319_v50 = vor.u32 %v318_v36, %v314_v34  ;;  %v1148_v57 = vsel %vm521_vm0, %v1734_v28, 0 }
  0x47   : > { %v487_v52 = vunpack.c.l.b16 %v469_v47  ;;  %v310_v55 = vrot.slane %v309_v40, 4  ;;  %1157 = vmatpush.bf16.msra.mxu2 %v1148_v57  ;;  %v1248_v4 = vsel %vm521_vm0, %v1747_v37, 0  ;;  %v1070_v0 = vsel %vm521_vm0, %v1725_v43, 0  ;;  %v1803_v43 = vld [vmem:[%s2112_s11 + $0xc] sm:$0xff] }
  0x48   : > { %v320_v62 = vrot.slane %v319_v50, 4  ;;  %v1332_v49 = vsel %vm521_vm0, %v1757_v46, 0  ;;  %v705_v9 = vrot.slane %v703_v56, 4  ;;  %1257 = vmatpush.bf16.msra.mxu3 %v1248_v4  ;;  %1079 = vmatpush.bf16.msra.mxu1 %v1070_v0  ;;  %v704_v16 = vsel %vm2311_vm7, %v1685_v51, %v703_v56  ;;  %v2368_v4 = vld [vmem:[%s2112_s11 + $0x18] sm:$0xff] }
  0x49   : > { %v2318_v8 = vpack.c.b16 %v487_v52, %v486_v48  ;;  %v315_v61 = vsel %vm2151_vm4, %v310_v55, %v314_v34  ;;  %1341 = vmatpush.bf16.msra.mxu0 %v1332_v49  ;;  %v759_v24 = vunpack.c.l.b16 %v704_v16  ;;  %v1687_v28 = vrot.slane %v2116_v5, 9  ;;  %v2393_v49 = vld [vmem:[%s2112_s11 + $0x30] sm:$0xff] }
  0x4a   : > { %v325_v10 = vsel %vm2151_vm4, %v320_v62, %v324_v42  ;;  %v474_v11 = vunpack.c.l.b16 %v315_v61  ;;  %v707_v17 = vsel %vm2311_vm7, %v705_v9, %v706_v26  ;;  %v717_v32 = vrot.slane %v2119_v6, 5 }
  0x4b   : > { %1644 = vmatmul.msk.bf16.gmra.mxu3 %vm496_vm3, %v2318_v8  ;;  %v475_v13 = vunpack.c.l.b16 %v325_v10  ;;  %v760_v27 = vunpack.c.l.b16 %v707_v17  ;;  %v720_v34 = vrot.slane %v2122_v7, 5  ;;  %v710_v3 = vrot.slane %v2272_v60, 5  ;;  %v2413_v17 = vld [vmem:[%s2112_s11 + $0x3c] sm:$0xff] }
  0x4c   : > { %v718_v26 = vsel %vm2311_vm7, %v1687_v28, %v717_v32  ;;  %v719_v37 = vrot.slane %v717_v32, 4  ;;  %v1686_v5 = vrot.slane %v2259_v35, 9  ;;  %v713_v7 = vrot.slane %v2277_v1, 5 }
  0x4d   : > { %v489_v19 = vpack.c.b16 %v475_v13, %v474_v11  ;;  %v775_v36 = vpack.c.b16 %v760_v27, %v759_v24  ;;  %v763_v39 = vunpack.c.l.b16 %v718_v26  ;;  %v712_v6 = vrot.slane %v710_v3, 4 }
  0x4e   : > { %v721_v40 = vsel %vm2311_vm7, %v719_v37, %v720_v34  ;;  %v711_v60 = vsel %vm2311_vm7, %v1686_v5, %v710_v3  ;;  %v1688_v35 = vrot.slane %v2200_v22, 9  ;;  %v724_v1 = vrot.slane %v2210_v33, 5  ;;  %v2433_v34 = vld [vmem:[%s2112_s11 + $0x48] sm:$0xff] }
  0x4f   : > { %1638 = vmatmul.msk.bf16.gmra.mxu0 %vm496_vm3, %v489_v19  ;;  %v764_v42 = vunpack.c.l.b16 %v721_v40  ;;  %v714_v47 = vsel %vm2311_vm7, %v712_v6, %v713_v7  ;;  %v761_v48 = vunpack.c.l.b16 %v711_v60  ;;  %v727_v51 = vrot.slane %v2216_v38, 5  ;;  %v2381_v38 = vld [vmem:[%s2112_s11 + $0x24] sm:$0xff] }
  0x50   : > { %v762_v50 = vunpack.c.l.b16 %v714_v47  ;;  %v725_v55 = vsel %vm2311_vm7, %v1688_v35, %v724_v1  ;;  %v726_v56 = vrot.slane %v724_v1, 4  ;;  %v731_v0 = vrot.slane %v2133_v14, 5  ;;  %v2469_v35 = vld [vmem:[%s2112_s11 + $0x54] sm:$0xff] }
  0x51   : > { %1677 = vmatmul.msk.bf16.vlgmr.msrb.gmra.mxu1 %vm496_vm3, %v1802_v20  ;;  %v2347_v46 = vpack.c.b16 %v764_v42, %v763_v39  ;;  %v765_v57 = vunpack.c.l.b16 %v725_v55  ;;  %v1689_v61 = vrot.slane %v2129_v12, 9  ;;  %v734_v10 = vrot.slane %v2136_v15, 5 }
  0x52   : > { %v2359_v52 = vpack.c.b16 %v762_v50, %v761_v48  ;;  %v728_v62 = vsel %vm2311_vm7, %v726_v56, %v727_v51  ;;  %v733_v9 = vrot.slane %v731_v0, 4  ;;  %v738_v15 = vrot.slane %v2230_v54, 5 }
  0x53   : > { %v766_v22 = vunpack.c.l.b16 %v728_v62  ;;  %v732_v11 = vsel %vm2311_vm7, %v1689_v61, %v731_v0  ;;  %v741_v24 = vrot.slane %v2237_v59, 5  ;;  %v745_v59 = vrot.slane %v2147_v30, 5  ;;  %v2474_v0 = vld [vmem:[%s2112_s11 + $0x68] sm:$0x1] }
  0x54   : > { %v735_v14 = vsel %vm2311_vm7, %v733_v9, %v734_v10  ;;  %v767_v13 = vunpack.c.l.b16 %v732_v11  ;;  %v740_v20 = vrot.slane %v738_v15, 4  ;;  %v748_v26 = vrot.slane %v2158_v41, 5  ;;  %v2453_v41 = vld [vmem:[%s2112_s11 + $0x64] sm:$0xf] }
  0x55   : > { %v2370_v33 = vpack.c.b16 %v766_v22, %v765_v57  ;;  %v768_v16 = vunpack.c.l.b16 %v735_v14  ;;  %v747_v3 = vrot.slane %v745_v59, 4  ;;  %v752_v5 = vrot.slane %v2250_v18, 5 }
  0x56   : > { %1694 = vmatmul.msk.bf16.vlgmr.msrb.gmra.mxu2 %vm496_vm3, %v775_v36  ;;  %v742_v54 = vsel %vm2311_vm7, %v740_v20, %v741_v24  ;;  %v1691_v36 = vrot.slane %v2140_v21, 9  ;;  %v2450_v21 = vld [vmem:[%s2112_s11 + $0x60] sm:$0xf]  ;;  %v963_v47 = vshll.u32 %v2453_v41, 16  ;;  %v967_v48 = vshrl.u32 %v2453_v41, 16 }
  0x57   : > { %v2407_v12 = vpack.c.b16 %v768_v16, %v767_v13  ;;  %v770_v32 = vunpack.c.l.b16 %v742_v54  ;;  %v749_v30 = vsel %vm2311_vm7, %v747_v3, %v748_v26  ;;  %v954_v7 = vshrl.u32 %v2450_v21, 16  ;;  %v2506_v3 = vld [vmem:[%s2112_s11 + $0x60] sm:$0xff] }
  0x58   : > { %v746_v39 = vsel %vm2311_vm7, %v1691_v36, %v745_v59  ;;  %v772_v42 = vunpack.c.l.b16 %v749_v30  ;;  %v957_v60 = vshll.u32 %v2450_v21, 16  ;;  %v1692_v18 = vrot.slane %v2243_v2, 9 }
  0x59   : > { %v771_v40 = vunpack.c.l.b16 %v746_v39  ;;  %v754_v1 = vrot.slane %v752_v5, 4  ;;  %v755_v51 = vrot.slane %v2253_v25, 5  ;;  %v956_v55 = vrot.slane %v954_v7, 4 }
  0x5a   : > { %v959_v56 = vrot.slane %v957_v60, 5  ;;  %v965_v57 = vrot.slane %v963_v47, 5  ;;  %v969_v62 = vrot.slane %v967_v48, 4  ;;  %v753_v9 = vsel %vm2311_vm7, %v1692_v18, %v752_v5 }
  0x5b   : > { %1707 = vmatmul.msk.bf16.vlgmr.msrb.gmra.mxu3 %vm496_vm3, %v1803_v43  ;;  %v756_v2 = vsel %vm2311_vm7, %v754_v1, %v755_v51  ;;  %v973_v11 = vshll.u32 %v2474_v0, 16  ;;  %v773_v13 = vunpack.c.l.b16 %v753_v9 }
  0x5c   : > { %v960_v10 = vor.u32 %v959_v56, %v956_v55  ;;  %v970_v25 = vor.u32 %v969_v62, %v965_v57  ;;  %v774_v16 = vunpack.c.l.b16 %v756_v2 }
  0x5d   : > { %v975_v24 = vrot.slane %v973_v11, 5 }
  0x5e   : > { %v971_v20 = vrot.slane %v970_v25, 4  ;;  %v2493_v54 = vpack.c.b16 %v774_v16, %v773_v13 }
  0x5f   : > { %1716 = vmatmul.msk.bf16.vlgmr.msrb.gmra.mxu0 %vm496_vm3, %v489_v19  ;;  %v1690_v19 = vrot.slane %v2222_v44, 9 }
  0x60   : > { %v976_v59 = vsel %vm2151_vm4, %v971_v20, %v975_v24 }
  0x61   : > { %1678 = vmatmul.msk.bf16.gmra.mxu1 %vm496_vm3, %v1803_v43  ;;  %v739_v27 = vsel %vm2311_vm7, %v1690_v19, %v738_v15  ;;  %v2455_v43 = vpack.c.b16 %v772_v42, %v771_v40  ;;  %v961_v19 = vrot.slane %v960_v10, 4  ;;  %v980_v39 = vunpack.c.l.b16 %v976_v59 }
  0x62   : > { %v769_v28 = vunpack.c.l.b16 %v739_v27 }
  0x64   : > { %v2427_v44 = vpack.c.b16 %v770_v32, %v769_v28  ;;  %v966_v32 = vsel %vm2151_vm4, %v961_v19, %v965_v57 }
  0x65   : > { %v979_v26 = vunpack.c.l.b16 %v966_v32 }
  0x66   : > { %1695 = vmatmul.msk.bf16.gmra.mxu2 %vm496_vm3, %v2359_v52 }
  0x67   : > { %v2512_v40 = vpack.c.b16 %v980_v39, %v979_v26 }
  0x6b   : > { %1708 = vmatmul.msk.bf16.gmra.mxu3 %vm496_vm3, %v2368_v4 }
  0x6f   : > { %1717 = vmatmul.msk.bf16.gmra.mxu0 %vm496_vm3, %v2170_v58 }
  0x71   : > { %1679 = vmatmul.msk.bf16.gmra.mxu1 %vm496_vm3, %v2368_v4 }
  0x76   : > { %1696 = vmatmul.msk.bf16.gmra.mxu2 %vm496_vm3, %v2347_v46 }
  0x7b   : > { %1709 = vmatmul.msk.bf16.gmra.mxu3 %vm496_vm3, %v2381_v38 }
  0x7f   : > { %1718 = vmatmul.msk.bf16.gmra.mxu0 %vm496_vm3, %v2269_v53 }
  0x81   : > { %1680 = vmatmul.msk.bf16.gmra.mxu1 %vm496_vm3, %v2381_v38 }
  0x86   : > { %1697 = vmatmul.msk.bf16.gmra.mxu2 %vm496_vm3, %v2370_v33 }
  0x8b   : > { %1710 = vmatmul.msk.bf16.gmra.mxu3 %vm496_vm3, %v2393_v49 }
  0x8f   : > { %1719 = vmatmul.msk.bf16.gmra.mxu0 %vm496_vm3, %v2202_v23 }
  0x91   : > { %1681 = vmatmul.msk.bf16.gmra.mxu1 %vm496_vm3, %v2393_v49 }
  0x96   : > { %1698 = vmatmul.msk.bf16.gmra.mxu2 %vm496_vm3, %v2407_v12 }
  0x9b   : > { %1711 = vmatmul.msk.bf16.gmra.mxu3 %vm496_vm3, %v2413_v17 }
  0x9f   : > { %1720 = vmatmul.msk.bf16.gmra.mxu0 %vm496_vm3, %v2290_v29 }
  0xa1   : > { %1682 = vmatmul.msk.bf16.gmra.mxu1 %vm496_vm3, %v2413_v17 }
  0xa6   : > { %1699 = vmatmul.msk.bf16.gmra.mxu2 %vm496_vm3, %v2427_v44 }
  0xab   : > { %1712 = vmatmul.msk.bf16.gmra.mxu3 %vm496_vm3, %v2433_v34  ;;  %v2439_v37 = vpop.f32.mrf.mxu1 }
  0xaf   : > { %1721 = vmatmul.msk.bf16.gmra.mxu0 %vm496_vm3, %v2224_v45 }
  0xb1   : > { %1683 = vmatmul.msk.bf16.gmra.mxu1 %vm496_vm3, %v2433_v34 }
  0xb3   : > { %v2458_v6 = vpop.f32.mrf.mxu1 }
  0xb5   : > { %v2464_v50 = vpop.f32.mrf.mxu2 }
  0xb6   : > { %1700 = vmatmul.msk.bf16.gmra.mxu2 %vm496_vm3, %v2455_v43 }
  0xb9   : > { %v534_v22 = vpop.f32.mrf.mxu0  ;;  %v2476_v61 = vpop.f32.mrf.mxu3 }
  0xbb   : > { %1713 = vmatmul.msk.bf16.gmra.mxu3 %vm496_vm3, %v2469_v35 }
  0xbd   : > { %v2489_v15 = vpop.f32.mrf.mxu2 }
  0xbe   : > { %v2485_v14 = vpop.f32.mrf.mxu1 }
  0xbf   : > { %1722 = vmatmul.msk.bf16.gmra.mxu0 %vm496_vm3, %v2318_v8 }
  0xc1   : > { %1684 = vmatmul.msk.bf16.gmra.mxu1 %vm496_vm3, %v2469_v35  ;;  %v536_v27 = vpop.f32.mrf.mxu0  ;;  %v2495_v28 = vpop.f32.mrf.mxu3 }
  0xc6   : > { %1701 = vmatmul.msk.bf16.gmra.mxu2 %vm496_vm3, %v2493_v54  ;;  %v2503_v36 = vpop.f32.mrf.mxu1 }
  0xc9   : > { %v2508_v30 = vpop.f32.mrf.mxu2 }
  0xcb   : > { %1714 = vmatmul.msk.bf16.gmra.mxu3 %vm496_vm3, %v2506_v3 }
  0xcc   : > { %v539_v42 = vpop.f32.mrf.mxu0 }
  0xce   : > { %v2514_v5 = vpop.f32.mrf.mxu3  ;;  %v650_v7 = vpop.f32.mrf.mxu1 }
  0xcf   : > { %1723 = vmatmul.msk.bf16.gmra.mxu0 %vm496_vm3, %v2512_v40  ;;  %v651_v60 = vadd.f32 %v650_v7, %v534_v22 }
  0xd1   : > { %v2518_v47 = vpop.f32.mrf.mxu2  ;;  %1726 = vmatmul.msk.bf16.vlgmr.msra.gmra.mxu1 %vm496_vm3, %v2359_v52 }
  0xd4   : > { %v541_v48 = vpop.f32.mrf.mxu0 }
  0xd6   : > { %v2522_v18 = vpop.f32.mrf.mxu3  ;;  %1739 = vmatmul.msk.bf16.vlgmr.msra.gmra.mxu2 %vm496_vm3, %v2368_v4  ;;  %v652_v1 = vpop.f32.mrf.mxu1 }
  0xd7   : > { %v653_v51 = vadd.f32 %v652_v1, %v536_v27 }
  0xd9   : > { %v819_v55 = vpop.f32.mrf.mxu2 }
  0xda   : > { %v859_v56 = vadd.f32 %v819_v55, %v651_v60 }
  0xdb   : > { %1748 = vmatmul.msk.bf16.vlgmr.msra.gmra.mxu3 %vm496_vm3, %v2170_v58 }
  0xdc   : > { %v997_v57 = vpop.f32.mrf.mxu0 }
  0xde   : > { %v897_v62 = vpop.f32.mrf.mxu3  ;;  %v655_v22 = vpop.f32.mrf.mxu1 }
  0xdf   : > { %1758 = vmatmul.msk.bf16.vlgmr.msra.gmra.mxu0 %vm496_vm3, %v2347_v46  ;;  %v937_v52 = vadd.f32 %v897_v62, %v859_v56  ;;  %v656_v9 = vadd.f32 %v655_v22, %v539_v42 }
  0xe1   : > { %v821_v2 = vpop.f32.mrf.mxu2  ;;  %1727 = vmatmul.msk.bf16.gmra.mxu1 %vm496_vm3, %v2347_v46  ;;  %v2532_v4 = vadd.f32 %v997_v57, %v937_v52 }
  0xe2   : > { %v860_v10 = vadd.f32 %v821_v2, %v653_v51 }
  0xe4   : > { %v999_v25 = vpop.f32.mrf.mxu0 }
  0xe6   : > { %v899_v11 = vpop.f32.mrf.mxu3  ;;  %1740 = vmatmul.msk.bf16.gmra.mxu2 %vm496_vm3, %v2381_v38  ;;  %v657_v58 = vpop.f32.mrf.mxu1 }
  0xe7   : > { %v938_v13 = vadd.f32 %v899_v11, %v860_v10  ;;  %v658_v16 = vadd.f32 %v657_v58, %v541_v48 }
  0xe9   : > { %v824_v19 = vpop.f32.mrf.mxu2  ;;  %v2536_v20 = vadd.f32 %v999_v25, %v938_v13 }
  0xea   : > { %v861_v24 = vadd.f32 %v824_v19, %v656_v9 }
  0xeb   : > { %1749 = vmatmul.msk.bf16.gmra.mxu3 %vm496_vm3, %v2269_v53 }
  0xec   : > { %v1002_v27 = vpop.f32.mrf.mxu0 }
  0xee   : > { %v902_v46 = vpop.f32.mrf.mxu3  ;;  %v660_v32 = vpop.f32.mrf.mxu1 }
  0xef   : > { %1759 = vmatmul.msk.bf16.gmra.mxu0 %vm496_vm3, %v2370_v33  ;;  %v939_v59 = vadd.f32 %v902_v46, %v861_v24  ;;  %v661_v26 = vadd.f32 %v660_v32, %v2439_v37 }
  0xf1   : > { %v826_v38 = vpop.f32.mrf.mxu2  ;;  %1728 = vmatmul.msk.bf16.gmra.mxu1 %vm496_vm3, %v2370_v33  ;;  %v2545_v39 = vadd.f32 %v1002_v27, %v939_v59 }
  0xf2   : > { %v862_v42 = vadd.f32 %v826_v38, %v658_v16 }
  0xf4   : > { %v1004_v7 = vpop.f32.mrf.mxu0 }
  0xf6   : > { %v904_v60 = vpop.f32.mrf.mxu3  ;;  %1741 = vmatmul.msk.bf16.gmra.mxu2 %vm496_vm3, %v2393_v49  ;;  %v662_v53 = vpop.f32.mrf.mxu1 }
  0xf7   : > { %v940_v48 = vadd.f32 %v904_v60, %v862_v42  ;;  %v663_v1 = vadd.f32 %v662_v53, %v2458_v6 }
  0xf9   : > { %v829_v51 = vpop.f32.mrf.mxu2  ;;  %v2550_v55 = vadd.f32 %v1004_v7, %v940_v48 }
  0xfa   : > { %v863_v37 = vadd.f32 %v829_v51, %v661_v26 }
  0xfb   : > { %1750 = vmatmul.msk.bf16.gmra.mxu3 %vm496_vm3, %v2202_v23 }
  0xfc   : > { %v1007_v33 = vpop.f32.mrf.mxu0 }
  0xfe   : > { %v907_v56 = vpop.f32.mrf.mxu3  ;;  %v665_v57 = vpop.f32.mrf.mxu1 }
  0xff   : > { %1760 = vmatmul.msk.bf16.gmra.mxu0 %vm496_vm3, %v2407_v12  ;;  %v941_v62 = vadd.f32 %v907_v56, %v863_v37  ;;  %v666_v49 = vadd.f32 %v665_v57, %v2485_v14 }
 0x101   : > { %v831_v22 = vpop.f32.mrf.mxu2  ;;  %1729 = vmatmul.msk.bf16.gmra.mxu1 %vm496_vm3, %v2407_v12  ;;  %v2559_v6 = vadd.f32 %v1007_v33, %v941_v62 }
 0x102   : > { %v864_v52 = vadd.f32 %v831_v22, %v663_v1  ;;  %v2597_v22 = vld [vmem:[%s2112_s11 + $0x6c] sm:$0xf] }
 0x104   : > { %v1009_v9 = vpop.f32.mrf.mxu0 }
 0x106   : > { %v909_v2 = vpop.f32.mrf.mxu3  ;;  %1742 = vmatmul.msk.bf16.gmra.mxu2 %vm496_vm3, %v2413_v17  ;;  %v667_v23 = vpop.f32.mrf.mxu1 }
 0x107   : > { %v942_v10 = vadd.f32 %v909_v2, %v864_v52  ;;  %v668_v25 = vadd.f32 %v667_v23, %v2503_v36  ;;  %v2600_v52 = vld [vmem:[%s2112_s11 + $0x70] sm:$0xf]  ;;  %v1724_v23 = vrot.slane %v2450_v21, 9 }
 0x109   : > { %v834_v11 = vpop.f32.mrf.mxu2  ;;  %v2564_v58 = vadd.f32 %v1009_v9, %v942_v10  ;;  %v1216_v10 = vshrl.u32 %v2597_v22, 16 }
 0x10a   : > { %v865_v14 = vadd.f32 %v834_v11, %v666_v49  ;;  %v1056_v49 = vrot.slane %v2453_v41, 5  ;;  %v1225_v11 = vshll.u32 %v2600_v52, 16 }
 0x10b   : > { %1751 = vmatmul.msk.bf16.gmra.mxu3 %vm496_vm3, %v2290_v29  ;;  %v1218_v21 = vrot.slane %v1216_v10, 4 }
 0x10c   : > { %v1012_v12 = vpop.f32.mrf.mxu0 }
 0x10e   : > { %v912_v13 = vpop.f32.mrf.mxu3  ;;  %v670_v16 = vpop.f32.mrf.mxu1 }
 0x10f   : > { %1761 = vmatmul.msk.bf16.gmra.mxu0 %vm496_vm3, %v2427_v44  ;;  %v943_v19 = vadd.f32 %v912_v13, %v865_v14  ;;  %v671_v59 = vadd.f32 %v670_v16, %v2464_v50 }
 0x111   : > { %v836_v24 = vpop.f32.mrf.mxu2  ;;  %1730 = vmatmul.msk.bf16.gmra.mxu1 %vm496_vm3, %v2427_v44  ;;  %v2572_v17 = vadd.f32 %v1012_v12, %v943_v19 }
 0x112   : > { %v866_v36 = vadd.f32 %v836_v24, %v668_v25  ;;  %v1058_v25 = vrot.slane %v1056_v49, 4  ;;  %v1057_v24 = vsel %vm2311_vm7, %v1724_v23, %v1056_v49  ;;  %v1811_v23 = vld [vmem:[%s2112_s11 + $0x6c] sm:$0xff] }
 0x114   : > { %v1014_v27 = vpop.f32.mrf.mxu0 }
 0x116   : > { %v914_v46 = vpop.f32.mrf.mxu3  ;;  %1743 = vmatmul.msk.bf16.gmra.mxu2 %vm496_vm3, %v2433_v34  ;;  %v672_v29 = vpop.f32.mrf.mxu1 }
 0x117   : > { %v944_v32 = vadd.f32 %v914_v46, %v866_v36  ;;  %v673_v34 = vadd.f32 %v672_v29, %v2489_v15  ;;  %v1227_v36 = vrot.slane %v1225_v11, 5  ;;  %v273_v46 = vld [vmem:[%s2112_s11 + $0x74] sm:$0x1] }
 0x119   : > { %v839_v26 = vpop.f32.mrf.mxu2  ;;  %v2577_v38 = vadd.f32 %v1014_v27, %v944_v32 }
 0x11a   : > { %v867_v42 = vadd.f32 %v839_v26, %v671_v59  ;;  %v1063_v59 = vunpack.c.l.b16 %v1057_v24 }
 0x11b   : > { %1752 = vmatmul.msk.bf16.gmra.mxu3 %vm496_vm3, %v2224_v45 }
 0x11c   : > { %v1017_v44 = vpop.f32.mrf.mxu0 }
 0x11e   : > { %v917_v7 = vpop.f32.mrf.mxu3  ;;  %v675_v60 = vpop.f32.mrf.mxu1 }
 0x11f   : > { %1762 = vmatmul.msk.bf16.gmra.mxu0 %vm496_vm3, %v2455_v43  ;;  %v945_v53 = vadd.f32 %v917_v7, %v867_v42  ;;  %v676_v56 = vadd.f32 %v675_v60, %v2508_v30  ;;  %v1235_v60 = vshll.u32 %v273_v46, 16 }
 0x121   : > { %v841_v48 = vpop.f32.mrf.mxu2  ;;  %1731 = vmatmul.msk.bf16.gmra.mxu1 %vm496_vm3, %v2455_v43  ;;  %v2586_v50 = vadd.f32 %v1017_v44, %v945_v53 }
 0x122   : > { %v868_v1 = vadd.f32 %v841_v48, %v673_v34 }
 0x124   : > { %v1019_v51 = vpop.f32.mrf.mxu0 }
 0x126   : > { %v919_v45 = vpop.f32.mrf.mxu3  ;;  %1744 = vmatmul.msk.bf16.gmra.mxu2 %vm496_vm3, %v2469_v35  ;;  %v677_v37 = vpop.f32.mrf.mxu1  ;;  %v1059_v35 = vrot.slane %v2474_v0, 5  ;;  %v1229_v0 = vshrl.u32 %v2600_v52, 16 }
 0x127   : > { %v946_v33 = vadd.f32 %v919_v45, %v868_v1  ;;  %v678_v41 = vadd.f32 %v677_v37, %v2518_v47  ;;  %v1237_v37 = vrot.slane %v1235_v60, 5 }
 0x128   : > { %v1060_v47 = vsel %vm2311_vm7, %v1058_v25, %v1059_v35  ;;  %v1231_v27 = vrot.slane %v1229_v0, 4 }
 0x129   : > { %v844_v57 = vpop.f32.mrf.mxu2  ;;  %v2591_v15 = vadd.f32 %v1019_v51, %v946_v33  ;;  %v1064_v26 = vunpack.c.l.b16 %v1060_v47  ;;  %v1318_v33 = vrot.slane %v2600_v52, 5 }
 0x12a   : > { %v869_v62 = vadd.f32 %v844_v57, %v676_v56  ;;  %v1232_v7 = vor.u32 %v1231_v27, %v1227_v36 }
 0x12b   : > { %1753 = vmatmul.msk.bf16.gmra.mxu3 %vm496_vm3, %v2318_v8  ;;  %v1219_v8 = vshll.u32 %v2597_v22, 16  ;;  %v1065_v1 = vpack.c.b16 %v1064_v26, %v1063_v59  ;;  %v1320_v35 = vrot.slane %v1318_v33, 4 }
 0x12c   : > { %v1022_v43 = vpop.f32.mrf.mxu0 }
 0x12d   : > { %v1221_v16 = vrot.slane %v1219_v8, 5 }
 0x12e   : > { %v922_v9 = vpop.f32.mrf.mxu3  ;;  %v680_v2 = vpop.f32.mrf.mxu1 }
 0x12f   : > { %1763 = vmatmul.msk.bf16.gmra.mxu0 %vm496_vm3, %v2493_v54  ;;  %v947_v30 = vadd.f32 %v922_v9, %v869_v62  ;;  %v1222_v42 = vor.u32 %v1221_v16, %v1218_v21  ;;  %v681_v44 = vadd.f32 %v680_v2, %v2476_v61  ;;  %v1321_v9 = vrot.slane %v273_v46, 5 }
 0x131   : > { %v846_v14 = vpop.f32.mrf.mxu2  ;;  %1732 = vmatmul.msk.bf16.gmra.mxu1 %vm496_vm3, %v2493_v54  ;;  %v2613_v12 = vadd.f32 %v1022_v43, %v947_v30  ;;  %v1223_v51 = vrot.slane %v1222_v42, 4  ;;  %v1756_v43 = vrot.slane %v2597_v22, 9 }
 0x132   : > { %v870_v13 = vadd.f32 %v846_v14, %v678_v41 }
 0x133   : > { %v1228_v62 = vsel %vm2151_vm4, %v1223_v51, %v1227_v36  ;;  %v1319_v22 = vsel %vm2311_vm7, %v1756_v43, %v1318_v33 }
 0x134   : > { %v1024_v19 = vpop.f32.mrf.mxu0  ;;  %v1241_v10 = vunpack.c.l.b16 %v1228_v62  ;;  %v1325_v14 = vunpack.c.l.b16 %v1319_v22 }
 0x136   : > { %v924_v29 = vpop.f32.mrf.mxu3  ;;  %1745 = vmatmul.msk.bf16.gmra.mxu2 %vm496_vm3, %v2506_v3  ;;  %v682_v54 = vpop.f32.mrf.mxu1  ;;  %v1233_v3 = vrot.slane %v1232_v7, 4 }
 0x137   : > { %v948_v32 = vadd.f32 %v924_v29, %v870_v13 }
 0x138   : > { %v1238_v49 = vsel %vm2151_vm4, %v1233_v3, %v1237_v37 }
 0x139   : > { %v849_v53 = vpop.f32.mrf.mxu2  ;;  %v2623_v34 = vadd.f32 %v1024_v19, %v948_v32  ;;  %v1242_v8 = vunpack.c.l.b16 %v1238_v49 }
 0x13a   : > { %v871_v48 = vadd.f32 %v849_v53, %v681_v44 }
 0x13b   : > { %1754 = vmatmul.msk.bf16.gmra.mxu3 %vm496_vm3, %v2512_v40  ;;  %v683_v40 = vadd.f32 %v682_v54, %v2495_v28  ;;  %v1322_v28 = vsel %vm2311_vm7, %v1320_v35, %v1321_v9  ;;  %v1243_v0 = vpack.c.b16 %v1242_v8, %v1241_v10 }
 0x13c   : > { %v1027_v45 = vpop.f32.mrf.mxu0  ;;  %v1326_v13 = vunpack.c.l.b16 %v1322_v28 }
 0x13e   : > { %v927_v56 = vpop.f32.mrf.mxu3  ;;  %v685_v57 = vpop.f32.mrf.mxu1  ;;  %v1327_v47 = vpack.c.b16 %v1326_v13, %v1325_v14 }
 0x13f   : > { %1764 = vmatmul.msk.bf16.gmra.mxu0 %vm496_vm3, %v1065_v1  ;;  %v949_v61 = vadd.f32 %v927_v56, %v871_v48  ;;  %v686_v21 = vadd.f32 %v685_v57, %v2514_v5 }
 0x141   : > { %v851_v2 = vpop.f32.mrf.mxu2  ;;  %1733 = vmatmul.msk.bf16.gmra.mxu1 %vm496_vm3, %v1065_v1  ;;  %v2636_v52 = vadd.f32 %v1027_v45, %v949_v61  ;;  %v2660_v61 = vld [vmem:[%s2767_s2] ss:$0 sm:$0xff] }
 0x142   : > { %v872_v30 = vadd.f32 %v851_v2, %v683_v40 }
 0x144   : > { %v1029_v41 = vpop.f32.mrf.mxu0 }
 0x146   : > { %v929_v31 = vpop.f32.mrf.mxu3  ;;  %1746 = vmatmul.msk.bf16.gmra.mxu2 %vm496_vm3, %v1811_v23  ;;  %v687_v25 = vpop.f32.mrf.mxu1 }
 0x147   : > { %v950_v11 = vadd.f32 %v929_v31, %v872_v30  ;;  %v688_v54 = vadd.f32 %v687_v25, %v2522_v18 }
 0x149   : > { %v854_v16 = vpop.f32.mrf.mxu2  ;;  %v2645_v19 = vadd.f32 %v1029_v41, %v950_v11 }
 0x14a   : > { %v873_v24 = vadd.f32 %v854_v16, %v686_v21 }
 0x14b   : > { %1755 = vmatmul.msk.bf16.gmra.mxu3 %vm496_vm3, %v1243_v0 }
 0x14c   : > { %v1032_v36 = vpop.f32.mrf.mxu0 }
 0x14e   : > { %v932_v63 = vpop.f32.mrf.mxu3  ;;  %v1081_v27 = vpop.f32.mrf.mxu1 }
 0x14f   : > { %1765 = vmatmul.msk.bf16.gmra.mxu0 %vm496_vm3, %v1327_v47  ;;  %v951_v46 = vadd.f32 %v932_v63, %v873_v24  ;;  %v1121_v29 = vadd.f32 %v1081_v27, %v2532_v4 }
 0x151   : > { %v856_v32 = vpop.f32.mrf.mxu2  ;;  %v2651_v59 = vadd.f32 %v1032_v36, %v951_v46 }
 0x152   : > { %v874_v5 = vadd.f32 %v856_v32, %v688_v54 }
 0x154   : > { %v1034_v26 = vpop.f32.mrf.mxu0 }
 0x156   : > { %v934_v42 = vpop.f32.mrf.mxu3  ;;  %v1083_v44 = vpop.f32.mrf.mxu1 }
 0x157   : > { %v952_v7 = vadd.f32 %v934_v42, %v874_v5  ;;  %v1122_v60 = vadd.f32 %v1083_v44, %v2536_v20 }
 0x159   : > { %v1159_v53 = vpop.f32.mrf.mxu2  ;;  %v2654_v48 = vadd.f32 %v1034_v26, %v952_v7 }
 0x15a   : > { %v1199_v1 = vadd.f32 %v1159_v53, %v1121_v29 }
 0x15c   : > { %v1343_v51 = vpop.f32.mrf.mxu0 }
 0x15e   : > { %v1259_v45 = vpop.f32.mrf.mxu3  ;;  %v1086_v3 = vpop.f32.mrf.mxu1 }
 0x15f   : > { %v1299_v4 = vadd.f32 %v1259_v45, %v1199_v1  ;;  %v1123_v18 = vadd.f32 %v1086_v3, %v2545_v39 }
 0x161   : > { %v1383_v37 = vadd.f32 %v1343_v51, %v1299_v4  ;;  %v1161_v33 = vpop.f32.mrf.mxu2 }
 0x162   : > { %v1200_v56 = vadd.f32 %v1161_v33, %v1122_v60 }
 0x163   : > { %v1403_v49 = vadd.f32 %v2660_v61, %v1383_v37 }
 0x164   : > { %v1345_v57 = vpop.f32.mrf.mxu0 }
 0x165   : > { %v1419_v23 = vmax.f32 %v1403_v49, 0.0 }
 0x166   : > { %v1261_v20 = vpop.f32.mrf.mxu3  ;;  %v1088_v62 = vpop.f32.mrf.mxu1 }
 0x167   : > { %v1300_v43 = vadd.f32 %v1261_v20, %v1200_v56  ;;  %v1124_v40 = vadd.f32 %v1088_v62, %v2550_v55 }
 0x169   : > { %v1384_v35 = vadd.f32 %v1345_v57, %v1300_v43  ;;  %v1164_v9 = vpop.f32.mrf.mxu2 }
 0x16a   : > { %v1201_v2 = vadd.f32 %v1164_v9, %v1123_v18 }
 0x16b   : > { %v1404_v39 = vadd.f32 %v2660_v61, %v1384_v35 }
 0x16c   : > { %v1348_v30 = vpop.f32.mrf.mxu0 }
 0x16d   : > { %v1420_v10 = vmax.f32 %v1404_v39, 0.0 }
 0x16e   : > { %v1264_v8 = vpop.f32.mrf.mxu3  ;;  %v1091_v41 = vpop.f32.mrf.mxu1 }
 0x16f   : > { %v1436_v22 = vadd.f32 %v1420_v10, %v1419_v23  ;;  %v1301_v28 = vadd.f32 %v1264_v8, %v1201_v2  ;;  %v1125_v31 = vadd.f32 %v1091_v41, %v2559_v6 }
 0x171   : > { %v1385_v25 = vadd.f32 %v1348_v30, %v1301_v28  ;;  %v1166_v11 = vpop.f32.mrf.mxu2 }
 0x172   : > { %v1202_v0 = vadd.f32 %v1166_v11, %v1124_v40 }
 0x173   : > { %v1405_v55 = vadd.f32 %v2660_v61, %v1385_v25 }
 0x174   : > { %v1350_v14 = vpop.f32.mrf.mxu0 }
 0x175   : > { %v1421_v13 = vmax.f32 %v1405_v55, 0.0 }
 0x176   : > { %v1266_v21 = vpop.f32.mrf.mxu3  ;;  %v1093_v16 = vpop.f32.mrf.mxu1 }
 0x177   : > { %v1437_v24 = vadd.f32 %v1436_v22, %v1421_v13  ;;  %v1302_v47 = vadd.f32 %v1266_v21, %v1202_v0  ;;  %v1126_v44 = vadd.f32 %v1093_v16, %v2564_v58 }
 0x179   : > { %v1386_v36 = vadd.f32 %v1350_v14, %v1302_v47  ;;  %v1169_v63 = vpop.f32.mrf.mxu2 }
 0x17a   : > { %v1203_v27 = vadd.f32 %v1169_v63, %v1125_v31 }
 0x17b   : > { %v1406_v46 = vadd.f32 %v2660_v61, %v1386_v36 }
 0x17c   : > { %v1353_v29 = vpop.f32.mrf.mxu0 }
 0x17d   : > { %v1422_v54 = vmax.f32 %v1406_v46, 0.0 }
 0x17e   : > { %v1269_v32 = vpop.f32.mrf.mxu3  ;;  %v1096_v6 = vpop.f32.mrf.mxu1 }
 0x17f   : > { %v1438_v5 = vadd.f32 %v1437_v24, %v1422_v54  ;;  %v1303_v26 = vadd.f32 %v1269_v32, %v1203_v27  ;;  %v1127_v33 = vadd.f32 %v1096_v6, %v2572_v17 }
 0x181   : > { %v1387_v42 = vadd.f32 %v1353_v29, %v1303_v26  ;;  %v1171_v7 = vpop.f32.mrf.mxu2 }
 0x182   : > { %v1204_v53 = vadd.f32 %v1171_v7, %v1126_v44 }
 0x183   : > { %v1407_v60 = vadd.f32 %v2660_v61, %v1387_v42 }
 0x184   : > { %v1355_v1 = vpop.f32.mrf.mxu0 }
 0x185   : > { %v1423_v51 = vmax.f32 %v1407_v60, 0.0 }
 0x186   : > { %v1271_v45 = vpop.f32.mrf.mxu3  ;;  %v1098_v3 = vpop.f32.mrf.mxu1 }
 0x187   : > { %v1439_v4 = vadd.f32 %v1438_v5, %v1423_v51  ;;  %v1304_v18 = vadd.f32 %v1271_v45, %v1204_v53  ;;  %v1128_v2 = vadd.f32 %v1098_v3, %v2577_v38 }
 0x189   : > { %v1388_v37 = vadd.f32 %v1355_v1, %v1304_v18  ;;  %v1174_v56 = vpop.f32.mrf.mxu2 }
 0x18a   : > { %v1205_v20 = vadd.f32 %v1174_v56, %v1127_v33 }
 0x18b   : > { %v1408_v57 = vadd.f32 %v2660_v61, %v1388_v37 }
 0x18c   : > { %v1358_v62 = vpop.f32.mrf.mxu0 }
 0x18d   : > { %v1424_v43 = vmax.f32 %v1408_v57, 0.0 }
 0x18e   : > { %v1274_v58 = vpop.f32.mrf.mxu3  ;;  %v1101_v40 = vpop.f32.mrf.mxu1 }
 0x18f   : > { %v1440_v49 = vadd.f32 %v1439_v4, %v1424_v43  ;;  %v1305_v35 = vadd.f32 %v1274_v58, %v1205_v20  ;;  %v1129_v25 = vadd.f32 %v1101_v40, %v2586_v50 }
 0x191   : > { %v1389_v9 = vadd.f32 %v1358_v62, %v1305_v35  ;;  %v1176_v39 = vpop.f32.mrf.mxu2 }
 0x192   : > { %v1206_v23 = vadd.f32 %v1176_v39, %v1128_v2 }
 0x193   : > { %v1409_v30 = vadd.f32 %v2660_v61, %v1389_v9 }
 0x194   : > { %v1360_v10 = vpop.f32.mrf.mxu0 }
 0x195   : > { %v1425_v8 = vmax.f32 %v1409_v30, 0.0 }
 0x196   : > { %v1276_v17 = vpop.f32.mrf.mxu3  ;;  %v1103_v41 = vpop.f32.mrf.mxu1 }
 0x197   : > { %v1441_v22 = vadd.f32 %v1440_v49, %v1425_v8  ;;  %v1306_v28 = vadd.f32 %v1276_v17, %v1206_v23  ;;  %v1130_v36 = vadd.f32 %v1103_v41, %v2591_v15 }
 0x199   : > { %v1390_v31 = vadd.f32 %v1360_v10, %v1306_v28  ;;  %v1179_v11 = vpop.f32.mrf.mxu2 }
 0x19a   : > { %v1207_v55 = vadd.f32 %v1179_v11, %v1129_v25 }
 0x19b   : > { %v1410_v0 = vadd.f32 %v2660_v61, %v1390_v31 }
 0x19c   : > { %v1363_v14 = vpop.f32.mrf.mxu0 }
 0x19d   : > { %v1426_v13 = vmax.f32 %v1410_v0, 0.0 }
 0x19e   : > { %v1279_v38 = vpop.f32.mrf.mxu3  ;;  %v1106_v21 = vpop.f32.mrf.mxu1 }
 0x19f   : > { %v1442_v16 = vadd.f32 %v1441_v22, %v1426_v13  ;;  %v1307_v24 = vadd.f32 %v1279_v38, %v1207_v55  ;;  %v1131_v42 = vadd.f32 %v1106_v21, %v2613_v12 }
 0x1a1   : > { %v1391_v47 = vadd.f32 %v1363_v14, %v1307_v24  ;;  %v1181_v63 = vpop.f32.mrf.mxu2 }
 0x1a2   : > { %v1208_v46 = vadd.f32 %v1181_v63, %v1130_v36 }
 0x1a3   : > { %v1411_v27 = vadd.f32 %v2660_v61, %v1391_v47 }
 0x1a4   : > { %v1365_v29 = vpop.f32.mrf.mxu0 }
 0x1a5   : > { %v1427_v54 = vmax.f32 %v1411_v27, 0.0 }
 0x1a6   : > { %v1281_v50 = vpop.f32.mrf.mxu3  ;;  %v1108_v32 = vpop.f32.mrf.mxu1 }
 0x1a7   : > { %v1443_v6 = vadd.f32 %v1442_v16, %v1427_v54  ;;  %v1308_v5 = vadd.f32 %v1281_v50, %v1208_v46  ;;  %v1132_v18 = vadd.f32 %v1108_v32, %v2623_v34 }
 0x1a9   : > { %v1392_v26 = vadd.f32 %v1365_v29, %v1308_v5  ;;  %v1184_v44 = vpop.f32.mrf.mxu2 }
 0x1aa   : > { %v1209_v60 = vadd.f32 %v1184_v44, %v1131_v42 }
 0x1ab   : > { %v1412_v7 = vadd.f32 %v2660_v61, %v1392_v26 }
 0x1ac   : > { %v1368_v53 = vpop.f32.mrf.mxu0 }
 0x1ad   : > { %v1428_v1 = vmax.f32 %v1412_v7, 0.0 }
 0x1ae   : > { %v1284_v15 = vpop.f32.mrf.mxu3  ;;  %v1111_v3 = vpop.f32.mrf.mxu1 }
 0x1af   : > { %v1444_v51 = vadd.f32 %v1443_v6, %v1428_v1  ;;  %v1309_v45 = vadd.f32 %v1284_v15, %v1209_v60  ;;  %v1133_v40 = vadd.f32 %v1111_v3, %v2636_v52 }
 0x1b1   : > { %v1393_v4 = vadd.f32 %v1368_v53, %v1309_v45  ;;  %v1186_v37 = vpop.f32.mrf.mxu2 }
 0x1b2   : > { %v1210_v56 = vadd.f32 %v1186_v37, %v1132_v18 }
 0x1b3   : > { %v1413_v33 = vadd.f32 %v2660_v61, %v1393_v4 }
 0x1b4   : > { %v1370_v57 = vpop.f32.mrf.mxu0 }
 0x1b5   : > { %v1429_v20 = vmax.f32 %v1413_v33, 0.0 }
 0x1b6   : > { %v1286_v12 = vpop.f32.mrf.mxu3  ;;  %v1113_v35 = vpop.f32.mrf.mxu1 }
 0x1b7   : > { %v1445_v62 = vadd.f32 %v1444_v51, %v1429_v20  ;;  %v1310_v43 = vadd.f32 %v1286_v12, %v1210_v56  ;;  %v1134_v17 = vadd.f32 %v1113_v35, %v2645_v19 }
 0x1b9   : > { %v1394_v58 = vadd.f32 %v1370_v57, %v1310_v43  ;;  %v1189_v49 = vpop.f32.mrf.mxu2 }
 0x1ba   : > { %v1211_v2 = vadd.f32 %v1189_v49, %v1133_v40 }
 0x1bb   : > { %v1414_v9 = vadd.f32 %v2660_v61, %v1394_v58 }
 0x1bc   : > { %v1373_v39 = vpop.f32.mrf.mxu0 }
 0x1bd   : > { %v1430_v30 = vmax.f32 %v1414_v9, 0.0 }
 0x1be   : > { %v1289_v34 = vpop.f32.mrf.mxu3  ;;  %v1116_v31 = vpop.f32.mrf.mxu1 }
 0x1bf   : > { %v1446_v23 = vadd.f32 %v1445_v62, %v1430_v30  ;;  %v1311_v10 = vadd.f32 %v1289_v34, %v1211_v2  ;;  %v1135_v13 = vadd.f32 %v1116_v31, %v2651_v59 }
 0x1c1   : > { %v1395_v8 = vadd.f32 %v1373_v39, %v1311_v10  ;;  %v1191_v41 = vpop.f32.mrf.mxu2 }
 0x1c2   : > { %v1212_v28 = vadd.f32 %v1191_v41, %v1134_v17 }
 0x1c3   : > { %v1415_v22 = vadd.f32 %v2660_v61, %v1395_v8 }
 0x1c4   : > { %v1375_v25 = vpop.f32.mrf.mxu0 }
 0x1c5   : > { %v1431_v52 = vmax.f32 %v1415_v22, 0.0 }
 0x1c6   : > { %v1291_v11 = vpop.f32.mrf.mxu3  ;;  %v1118_v47 = vpop.f32.mrf.mxu1 }
 0x1c7   : > { %v1447_v0 = vadd.f32 %v1446_v23, %v1431_v52  ;;  %v1312_v55 = vadd.f32 %v1291_v11, %v1212_v28  ;;  %v1136_v29 = vadd.f32 %v1118_v47, %v2654_v48  ;;  %v1435_v48 = vld [vmem:[#allocation2] sm:$0x1] }
 0x1c9   : > { %v1396_v14 = vadd.f32 %v1375_v25, %v1312_v55  ;;  %v1194_v38 = vpop.f32.mrf.mxu2 }
 0x1ca   : > { %v1213_v16 = vadd.f32 %v1194_v38, %v1135_v13 }
 0x1cb   : > { %v1416_v21 = vadd.f32 %v2660_v61, %v1396_v14 }
 0x1cc   : > { %v1378_v19 = vpop.f32.mrf.mxu0 }
 0x1cd   : > { %v1432_v24 = vmax.f32 %v1416_v21, 0.0 }
 0x1ce   : > { %v1294_v36 = vpop.f32.mrf.mxu3 }
 0x1cf   : > { %v1448_v63 = vadd.f32 %v1447_v0, %v1432_v24  ;;  %v1313_v27 = vadd.f32 %v1294_v36, %v1213_v16 }
 0x1d1   : > { %v1397_v46 = vadd.f32 %v1378_v19, %v1313_v27  ;;  %v1196_v54 = vpop.f32.mrf.mxu2 }
 0x1d2   : > { %v1214_v32 = vadd.f32 %v1196_v54, %v1136_v29 }
 0x1d3   : > { %v1417_v50 = vadd.f32 %v2660_v61, %v1397_v46 }
 0x1d4   : > { %v1380_v42 = vpop.f32.mrf.mxu0 }
 0x1d5   : > { %v1433_v6 = vmax.f32 %v1417_v50, 0.0 }
 0x1d6   : > { %v1296_v5 = vpop.f32.mrf.mxu3 }
 0x1d7   : > { %v1449_v59 = vadd.f32 %v1448_v63, %v1433_v6  ;;  %v1314_v26 = vadd.f32 %v1296_v5, %v1214_v32 }
 0x1d9   : > { %v1398_v44 = vadd.f32 %v1380_v42, %v1314_v26 }
 0x1db   : > { %v1418_v7 = vadd.f32 %v2660_v61, %v1398_v44 }
 0x1dd   : > { %v1434_v60 = vmax.f32 %v1418_v7, 0.0 }
 0x1df   : > { %v1450_v53 = vadd.f32 %v1449_v59, %v1434_v60 }
 0x1e1   : > { %v1451_v1 = vrot.slane %v1450_v53, 4 }
 0x1e3   : > { %v1452_v15 = vadd.f32 %v1451_v1, %v1450_v53 }
 0x1e5   : > { %v1453_v51 = vrot.slane %v1452_v15, 2 }
 0x1e7   : > { %v1454_v45 = vadd.f32 %v1453_v51, %v1452_v15 }
 0x1e9   : > { %v1455_v3 = vrot.slane %v1454_v45, 1 }
 0x1eb   : > { %v1456_v4 = vadd.f32 %v1455_v3, %v1454_v45  ;;  %1462 = sbr.rel (%p1766_p0) target bundleno = 662 (0x296), region = 48 }
 0x1ed   : > { %v1457_v18 = vadd.f32 %v1456_v4, %v1435_v48 }
 0x1ef   : > { %1458 = vst [vmem:[#allocation2] sm:$0x1] %v1457_v18 }
 0x1f0   : > { %v1819_v37 = vld [vmem:[%s2768_s3 + $0x38] sm:$0xff]  ;;  %v1818_v61 = vld [vmem:[%s2768_s3 + $0x30] sm:$0xff]  ;;  %v1817_v33 = vld [vmem:[%s2768_s3 + $0x28] sm:$0xff] }
 0x1f1   : > { %1531 = vmatpush.bf16.msra.mxu0 %v1819_v37  ;;  %v1816_v56 = vld [vmem:[%s2768_s3 + $0x20] sm:$0xff]  ;;  %v1815_v57 = vld [vmem:[%s2768_s3 + $0x18] sm:$0xff]  ;;  %v1814_v20 = vld [vmem:[%s2768_s3 + $0x10] sm:$0xff] }
 0x1f2   : > { %v1813_v12 = vld [vmem:[%s2768_s3 + $0x8] sm:$0xff]  ;;  %v1812_v58 = vld [vmem:[%s2768_s3] sm:$0xff] }
 0x1f3   : > { %v1482_v49 = vld [vmem:[%s2769_s4] sm:$0x1] }
 0x1f5   : > { %1532 = vmatpush.bf16.msra.mxu0 %v1818_v61 }
 0x1f6   : > { %v1463_v62 = vld [vmem:[#allocation2] sm:$0x1] }
 0x1f7   : > { %v1464_v43 = vmul.f32 0.00390625, %v1463_v62 }
 0x1f9   : > { %1533 = vmatpush.bf16.msra.mxu0 %v1817_v33  ;;  %v1465_v40 = vpack.c.bf16 %v1464_v43, %v1464_v43 }
 0x1fd   : > { %1534 = vmatpush.bf16.msra.mxu0 %v1816_v56 }
 0x201   : > { %1535 = vmatpush.bf16.msra.mxu0 %v1815_v57 }
 0x205   : > { %1536 = vmatpush.bf16.msra.mxu0 %v1814_v20 }
 0x209   : > { %1537 = vmatpush.bf16.msra.mxu0 %v1813_v12 }
 0x20d   : > { %1538 = vmatpush.bf16.msra.mxu0 %v1812_v58 }
 0x210   : > { %1539 = vmatmul.bf16.vlgmr.msra.gmra.mxu0 %v1465_v40 }
 0x28d   : > { %v1540_v35 = vpop.f32.mrf.mxu0 }
 0x28e   : > { %v1541_v9 = vadd.f32 %v1540_v35, %v1482_v49 }
 0x290   : > { %1544 = vst [vmem:[%s2101_s16] sm:$0x1] %v1541_v9 }
 0x295   : > { %v1542_v2 = vpop.f32.mrf.mxu0 }
 0x296 PF: > { %s1554_s11 = scalar_lea.hbm %s2770_s5, %s1979_s22  ;;  %s1556_s26 = sshll.u32 %s2101_s16, 4  ;;  %s1557_s26 = int_to_ptr.vmem [resolvable:$true] %s1556_s26 }
 0x297   : > { %s1558_s27 = sshll.u32 %s1554_s11, 4  ;;  %s1546_s7 = scalar_lea.sflag [#allocation4], %s227_s10  ;;  %s1559_s27 = int_to_ptr.hbm [resolvable:$true] %s1558_s27 }
 0x298   : > { %s1911_s8 = sshra.s32 %s1559_s27, 4  ;;  %s1917_s15 = scalar_lea.hbm %s2770_s5, 2  ;;  %s1912_s8 = int_to_ptr.hbm [resolvable:$true] %s1911_s8 }
 0x299   : > { %s1913_s12 = scalar_lea.hbm %s1912_s8, 1  ;;  %p1918_p5 = scmp.lt.s32.totalorder %s1912_s8, %s2770_s5 }
 0x29a   : > { %p1914_p1 = scmp.ne.s32.totalorder %s1912_s8, %s1913_s12  ;;  %p1919_p6 = scmp.lt.s32.totalorder %s1917_s15, %s1913_s12 }
 0x29c   : > { %p1915_p2 = pnand %p1914_p1, %p2073_p3  ;;  %p1920_p7 = por %p1919_p6, %p1918_p5 }
 0x29e   : > { %p1916_p4 = pneg %p1915_p2 }
 0x2a0   : > { %p1921_p8 = pnand %p1920_p7, %p1916_p4 }
 0x2a2   : > { %1924 = shalt.err (!%p1921_p8)
}
 0x2a3   : > { %1824 = dma.vmem_to_hbm [thread:$0]  (%p2073_p3), %s1557_s26, 16, %s1559_s27, %s1546_s7  }
 0x2a4 PF: > { %p1830_p10 = scmp.ge.s32.totalorder %s1991_s25, 2  ;;  %s1570_s22 = sand.u32 1, %s1963_s18  }
 0x2a5   : > { %s1571_s10 = scalar_lea.sflag [#allocation4], %s1570_s22 }
 0x2a6   : > { %p1827_p11 = pnand %p1830_p10, %p2083_p9 }
 0x2a8   : > { %p1828_p12 = pneg %p1827_p11 }
 0x2aa   : > { %1958 = dma.done.wait (%p1828_p12), %s1571_s10, 16  }
 0x2ab   : > { %1960 = vsyncadd (%p1828_p12), %s1571_s10, 4294967280  ;;  %s18_s25 = sadd.s32 1, %s1991_s25   ;;  %s2777_s18 = smov %s1967_s19 }
 0x2ac   : > { %p15_p13 = scmp.ge.s32.totalorder %s18_s25, 6   ;;  %s2778_s19 = smov %s1971_s20 }
 0x2ad   : > { %s2779_s20 = smov %s2091_s9  ;;  %s2780_s21 = smov %s1983_s23 }
 0x2ae   : > { %s2781_s22 = smov %s1987_s24  ;;  %s2782_s23 = smov %s2785_s28 }
 0x2af   : > { %s2783_s24 = smov %s2789_s29  ;;  %17 = sbr.rel (!%p15_p13) target bundleno = 5 (0x5), region = 92 }
 0x2b4   :  { %1576 = vsyncpa [#allocation4], 1 }
 0x2b5   :  { %1578 = vsyncpa [#allocation4 + $0x1], 1 }

</bundles_post_ra>
